<compile_context>
chip_gen: v5e
topology: v5e:2x2
jax: 0.10.0
libtpu: 0.0.40
codegen_flags: <defaults>
</compile_context>

<pallas_src>
import functools

import jax
import jax.numpy as jnp
from jax import lax
from jax.experimental import pallas as pl
from jax.experimental.pallas import tpu as pltpu


def _attention_kernel(x_ref, wqkv_ref, wo_ref, o_ref, *, heads, dim_head,
                      patches, tokens):
    """One grid step = `patches` (T) fused patches, R = T * N token rows.

    x_ref:    (R, D)      bf16 token rows for T independent patches
    wqkv_ref: (H, D, 3d)  per-head fused [Wq | Wk | Wv] (scale folded in Wq), bf16
    wo_ref:   (H, d, D)   per-head output-projection weights, bf16
    o_ref:    (R, D)      output rows (original input dtype)
    """
    d = dim_head
    x = x_ref[...]                                            # (R, D) bf16

    def head_body(h, y):
        # One fused (R, D) x (D, 3d) projection per head; f32 accumulation.
        qkv = jnp.dot(x, wqkv_ref[h],
                      preferred_element_type=jnp.float32)     # (R, 3d) f32
        q = qkv[:, :d].reshape(patches, tokens, d)            # (T, N, d) f32
        k = qkv[:, d:2 * d].reshape(patches, tokens, d)       # (T, N, d) f32
        v = qkv[:, 2 * d:].reshape(patches, tokens, d).astype(jnp.bfloat16)

        # Batched per-patch scores (no block-diagonal mask, no wasted work
        # on cross-patch entries).  Softmax scale is pre-folded into Wq.
        dots = lax.dot_general(q, k, (((2,), (2,)), ((0,), (0,))),
                               preferred_element_type=jnp.float32)  # (T, N, N)

        # Softmax in f32; normalization commutes with the PV matmul, so it is
        # applied afterwards to the (T, N, d) result instead of (T, N, N).
        m = jnp.max(dots, axis=-1, keepdims=True)
        e = jnp.exp(dots - m)
        s = jnp.sum(e, axis=-1, keepdims=True)
        pv = lax.dot_general(e.astype(jnp.bfloat16), v,
                             (((2,), (1,)), ((0,), (0,))),
                             preferred_element_type=jnp.float32)    # (T, N, d)
        out_h = (pv * pl.reciprocal(s, approx=False))
        out_h = out_h.reshape(patches * tokens, d)                  # (R, d)

        # Accumulate output projection per head (replaces lane-axis concat).
        return y + jnp.dot(out_h.astype(jnp.bfloat16), wo_ref[h],
                           preferred_element_type=jnp.float32)

    # fori_loop bounds per-head live ranges (fewer spills through the single
    # vector-store slot); unroll=True keeps LLO scheduler visibility.
    y = lax.fori_loop(0, heads, head_body,
                      jnp.zeros(o_ref.shape, jnp.float32), unroll=True)

    # Dropout p=0.0 in to_out is an identity.
    o_ref[...] = y.astype(o_ref.dtype)


def _chip_params():
    """(rows_cap, force_multi_step): per-step row cap and whether to force
    >=2 grid steps.  v5e: 128-wide MXU output -> cap 128; v7x: 2 TensorCores
    per chip -> split the parallel grid axis; v6e and unknown chips: cap 256,
    single step is fine (1 TC)."""
    kind = ""
    try:
        kind = jax.devices()[0].device_kind.lower()
    except Exception:  # pragma: no cover - defensive
        pass
    is_v5e = ("v5 lite" in kind) or ("v5e" in kind) or ("v5litepod" in kind)
    is_v7 = "v7" in kind
    rows_cap = 128 if is_v5e else 256
    return rows_cap, is_v7


def _choose_patch_tile(num_patches, tokens_per_patch, *, rows_cap, multi_step):
    """Patches fused per grid step (R = t * N rows per step).

    rows_cap bounds R so per-step temporaries stay comfortably inside the
    register file / scoped VMEM.  With the batched per-patch formulation the
    intermediates scale linearly in t (no (R, R) score matrix), so the full
    array fallback for non-8-aligned N is safe rather than quadratic."""
    def ok(t):
        return (num_patches % t == 0) and (
            (t * tokens_per_patch) % 8 == 0 or t == num_patches)

    max_t = max(1, rows_cap // max(tokens_per_patch, 1))
    t = max(1, min(num_patches, max_t))
    while t > 1 and not ok(t):
        t -= 1
    if not ok(t):
        # N not 8-aligned: use the whole array as one (untiled) block.
        # TODO(synk): pad rows to a multiple of 8 instead for very large B*P.
        t = num_patches

    if multi_step and num_patches > 1 and num_patches // t < 2:
        # v7x only: ensure >=2 grid steps so both TensorCores get work.
        cand = t
        while cand > 1:
            cand -= 1
            if ok(cand) and num_patches // cand >= 2:
                t = cand
                break
    return t


def attention_forward(x, w_qkv, w_out, *, heads, dim_head):
    """x: (B, P, N, D); w_qkv: (3*inner, D); w_out: (D, inner) (PyTorch layout)."""
    B, P, N, D = x.shape
    inner = heads * dim_head
    assert w_qkv.shape == (3 * inner, D)
    assert w_out.shape == (D, inner)
    scale = dim_head ** -0.5
    out_dtype = x.dtype

    BP = B * P
    rows_cap, multi_step = _chip_params()
    T = _choose_patch_tile(BP, N, rows_cap=rows_cap, multi_step=multi_step)
    R = T * N

    # One-time weight prep (fused under jit): split into per-head slabs, fold
    # the softmax scale into Wq, fuse [Wq|Wk|Wv] per head, cast to bf16.
    wq, wk, wv = jnp.split(w_qkv, 3, axis=0)                 # each (inner, D)

    def to_heads(w):                                         # (inner,D)->(H,D,d)
        return jnp.transpose(w.reshape(heads, dim_head, D), (0, 2, 1))

    wqkv_h = jnp.concatenate(
        [to_heads(wq) * scale, to_heads(wk), to_heads(wv)],
        axis=-1).astype(jnp.bfloat16)                        # (H, D, 3d)
    wo_h = jnp.transpose(w_out.reshape(D, heads, dim_head),
                         (1, 2, 0)).astype(jnp.bfloat16)     # (H, d, D)

    x2 = x.reshape(BP * N, D).astype(jnp.bfloat16)

    kernel = functools.partial(_attention_kernel, heads=heads,
                               dim_head=dim_head, patches=T, tokens=N)

    out = pl.pallas_call(
        kernel,
        out_shape=jax.ShapeDtypeStruct((BP * N, D), out_dtype),
        grid=(BP // T,),
        in_specs=[
            pl.BlockSpec((R, D), lambda i: (i, 0)),                       # x rows
            pl.BlockSpec((heads, D, 3 * dim_head), lambda i: (0, 0, 0)),  # W_qkv
            pl.BlockSpec((heads, dim_head, D), lambda i: (0, 0, 0)),      # W_out
        ],
        out_specs=pl.BlockSpec((R, D), lambda i: (i, 0)),
        compiler_params=pltpu.CompilerParams(
            dimension_semantics=("parallel",)),
    )(x2, wqkv_h, wo_h)

    return out.reshape(B, P, N, D)


def _reference_forward(x, w_qkv, w_out, *, heads, dim_head):
    """Pure-JAX f32 reference matching the PyTorch forward exactly."""
    B, P, N, D = x.shape
    inner = heads * dim_head
    scale = dim_head ** -0.5
    qkv = jnp.einsum('bpnd,ed->bpne', x, w_qkv)              # (B,P,N,3*inner)
    q, k, v = jnp.split(qkv, 3, axis=-1)

    def split_heads(t):  # 'b p n (h d) -> b p h n d'
        return t.reshape(B, P, N, heads, dim_head).transpose(0, 1, 3, 2, 4)

    q, k, v = map(split_heads, (q, k, v))
    dots = jnp.einsum('bphnd,bphmd->bphnm', q, k) * scale
    attn = jax.nn.softmax(dots, axis=-1)
    out = jnp.einsum('bphnm,bphmd->bphnd', attn, v)
    out = out.transpose(0, 1, 3, 2, 4).reshape(B, P, N, inner)
    return jnp.einsum('bpni,di->bpnd', out, w_out)


if __name__ == "__main__":
    # Module config (small): dim=32, heads=4, dim_head=16 -> inner_dim=64
    dim, heads, dim_head = 32, 4, 16
    inner_dim = heads * dim_head
    B, P, N = 2, 2, 8

    key = jax.random.PRNGKey(0)
    kx, kq, ko = jax.random.split(key, 3)

    # Deterministic PyTorch-like Linear init: U(-1/sqrt(fan_in), 1/sqrt(fan_in))
    bound_qkv = 1.0 / (dim ** 0.5)
    bound_out = 1.0 / (inner_dim ** 0.5)
    w_qkv = jax.random.uniform(kq, (3 * inner_dim, dim), jnp.float32,
                               -bound_qkv, bound_qkv)
    w_out = jax.random.uniform(ko, (dim, inner_dim), jnp.float32,
                               -bound_out, bound_out)

    x = jax.random.normal(kx, (B, P, N, dim), jnp.float32)

    fwd = jax.jit(functools.partial(attention_forward,
                                    heads=heads, dim_head=dim_head))
    y = jax.block_until_ready(fwd(x, w_qkv, w_out))

    y_ref = _reference_forward(x, w_qkv, w_out, heads=heads, dim_head=dim_head)
    assert y.shape == (B, P, N, dim)
    max_err = jnp.max(jnp.abs(y - y_ref))
    # Tolerance reflects bf16 MXU operands (~2^-8 relative per matmul input);
    # softmax and all matmul accumulation remain in f32.
    assert jnp.allclose(y, y_ref, atol=3e-2, rtol=3e-2), \
        f"max abs err {max_err}"

    print("KERNEL_OK")
</pallas_src>

<mosaic_0001>
module attributes {stable_mosaic.version = 11 : i64} {
  func.func @_attention_kernel(%arg0: i32, %arg1: memref<32x32xbf16, #tpu.memory_space<vmem>>, %arg2: memref<4x32x48xbf16, #tpu.memory_space<vmem>>, %arg3: memref<4x16x32xbf16, #tpu.memory_space<vmem>>, %arg4: memref<32x32xf32, #tpu.memory_space<vmem>>) attributes {dimension_semantics = [#tpu.dimension_semantics<parallel>], iteration_bounds = array<i64: 1>, scalar_prefetch = 0 : i64, scratch_operands = 0 : i64, tpu.core_type = #tpu.core_type<tc>, window_params = [{transform_indices = @transform_0, window_bounds = array<i64: 32, 32>}, {pipeline_mode = #tpu.pipeline_mode<synchronous>, transform_indices = @transform_1, window_bounds = array<i64: 4, 32, 48>}, {pipeline_mode = #tpu.pipeline_mode<synchronous>, transform_indices = @transform_2, window_bounds = array<i64: 4, 16, 32>}, {transform_indices = @transform_3, window_bounds = array<i64: 32, 32>}]} {
    %c0 = arith.constant 0 : index
    %c0_0 = arith.constant 0 : index
    %0 = vector.load %arg1[%c0, %c0_0] : memref<32x32xbf16, #tpu.memory_space<vmem>>, vector<32x32xbf16>
    %cst = arith.constant 0.000000e+00 : f32
    %1 = vector.broadcast %cst : f32 to vector<32x32xf32>
    %c0_i32 = arith.constant 0 : i32
    %2 = arith.index_cast %c0_i32 : i32 to index
    %c0_1 = arith.constant 0 : index
    %c0_2 = arith.constant 0 : index
    %3 = vector.load %arg2[%2, %c0_1, %c0_2] : memref<4x32x48xbf16, #tpu.memory_space<vmem>>, vector<1x32x48xbf16>
    %4 = vector.shape_cast %3 : vector<1x32x48xbf16> to vector<32x48xbf16>
    %cst_3 = arith.constant dense<0.000000e+00> : vector<32x48xf32>
    %5 = tpu.matmul %0, %4, %cst_3 {dimension_numbers = #tpu.dot_dimension_numbers<[1], [0], [0], [1], [0, 0, 1, 1], [], []>} : vector<32x32xbf16>, vector<32x48xbf16>, vector<32x48xf32> -> vector<32x48xf32>
    %6 = vector.extract_strided_slice %5 {offsets = [0, 0], sizes = [32, 16], strides = [1, 1]} : vector<32x48xf32> to vector<32x16xf32>
    %7 = vector.shape_cast %6 : vector<32x16xf32> to vector<4x8x16xf32>
    %8 = vector.extract_strided_slice %5 {offsets = [0, 16], sizes = [32, 16], strides = [1, 1]} : vector<32x48xf32> to vector<32x16xf32>
    %9 = vector.shape_cast %8 : vector<32x16xf32> to vector<4x8x16xf32>
    %10 = vector.extract_strided_slice %5 {offsets = [0, 32], sizes = [32, 16], strides = [1, 1]} : vector<32x48xf32> to vector<32x16xf32>
    %11 = vector.shape_cast %10 : vector<32x16xf32> to vector<4x8x16xf32>
    %12 = arith.truncf %11 : vector<4x8x16xf32> to vector<4x8x16xbf16>
    %cst_4 = arith.constant dense<0.000000e+00> : vector<4x8x8xf32>
    %13 = tpu.matmul %7, %9, %cst_4 {dimension_numbers = #tpu.dot_dimension_numbers<[2], [2], [1], [1], [0, 0, 0, 1, 1, 1], [0], [0]>} : vector<4x8x16xf32>, vector<4x8x16xf32>, vector<4x8x8xf32> -> vector<4x8x8xf32>
    %cst_5 = arith.constant dense<0xFF800000> : vector<4x8xf32>
    %14 = vector.multi_reduction <maximumf>, %13, %cst_5 [2] : vector<4x8x8xf32> to vector<4x8xf32>
    %15 = vector.shape_cast %14 : vector<4x8xf32> to vector<4x8x1xf32>
    %16 = vector.broadcast %15 : vector<4x8x1xf32> to vector<4x8x8xf32>
    %17 = arith.subf %13, %16 : vector<4x8x8xf32>
    %18 = math.exp %17 : vector<4x8x8xf32>
    %cst_6 = arith.constant dense<0.000000e+00> : vector<4x8xf32>
    %19 = vector.multi_reduction <add>, %18, %cst_6 [2] : vector<4x8x8xf32> to vector<4x8xf32>
    %20 = vector.shape_cast %19 : vector<4x8xf32> to vector<4x8x1xf32>
    %21 = arith.truncf %18 : vector<4x8x8xf32> to vector<4x8x8xbf16>
    %cst_7 = arith.constant dense<0.000000e+00> : vector<4x8x16xf32>
    %22 = tpu.matmul %21, %12, %cst_7 {dimension_numbers = #tpu.dot_dimension_numbers<[2], [1], [1], [2], [0, 0, 0, 1, 1, 2], [0], [0]>} : vector<4x8x8xbf16>, vector<4x8x16xbf16>, vector<4x8x16xf32> -> vector<4x8x16xf32>
    %23 = tpu.reciprocal %20 : vector<4x8x1xf32> -> vector<4x8x1xf32>
    %24 = vector.broadcast %23 : vector<4x8x1xf32> to vector<4x8x16xf32>
    %25 = arith.mulf %22, %24 : vector<4x8x16xf32>
    %26 = vector.shape_cast %25 : vector<4x8x16xf32> to vector<32x16xf32>
    %27 = arith.truncf %26 : vector<32x16xf32> to vector<32x16xbf16>
    %28 = arith.index_cast %c0_i32 : i32 to index
    %c0_8 = arith.constant 0 : index
    %c0_9 = arith.constant 0 : index
    %29 = vector.load %arg3[%28, %c0_8, %c0_9] : memref<4x16x32xbf16, #tpu.memory_space<vmem>>, vector<1x16x32xbf16>
    %30 = vector.shape_cast %29 : vector<1x16x32xbf16> to vector<16x32xbf16>
    %cst_10 = arith.constant dense<0.000000e+00> : vector<32x32xf32>
    %31 = tpu.matmul %27, %30, %cst_10 {dimension_numbers = #tpu.dot_dimension_numbers<[1], [0], [0], [1], [0, 0, 1, 1], [], []>} : vector<32x16xbf16>, vector<16x32xbf16>, vector<32x32xf32> -> vector<32x32xf32>
    %32 = arith.addf %1, %31 : vector<32x32xf32>
    %c1_i32 = arith.constant 1 : i32
    %33 = arith.index_cast %c1_i32 : i32 to index
    %c0_11 = arith.constant 0 : index
    %c0_12 = arith.constant 0 : index
    %34 = vector.load %arg2[%33, %c0_11, %c0_12] : memref<4x32x48xbf16, #tpu.memory_space<vmem>>, vector<1x32x48xbf16>
    %35 = vector.shape_cast %34 : vector<1x32x48xbf16> to vector<32x48xbf16>
    %cst_13 = arith.constant dense<0.000000e+00> : vector<32x48xf32>
    %36 = tpu.matmul %0, %35, %cst_13 {dimension_numbers = #tpu.dot_dimension_numbers<[1], [0], [0], [1], [0, 0, 1, 1], [], []>} : vector<32x32xbf16>, vector<32x48xbf16>, vector<32x48xf32> -> vector<32x48xf32>
    %37 = vector.extract_strided_slice %36 {offsets = [0, 0], sizes = [32, 16], strides = [1, 1]} : vector<32x48xf32> to vector<32x16xf32>
    %38 = vector.shape_cast %37 : vector<32x16xf32> to vector<4x8x16xf32>
    %39 = vector.extract_strided_slice %36 {offsets = [0, 16], sizes = [32, 16], strides = [1, 1]} : vector<32x48xf32> to vector<32x16xf32>
    %40 = vector.shape_cast %39 : vector<32x16xf32> to vector<4x8x16xf32>
    %41 = vector.extract_strided_slice %36 {offsets = [0, 32], sizes = [32, 16], strides = [1, 1]} : vector<32x48xf32> to vector<32x16xf32>
    %42 = vector.shape_cast %41 : vector<32x16xf32> to vector<4x8x16xf32>
    %43 = arith.truncf %42 : vector<4x8x16xf32> to vector<4x8x16xbf16>
    %cst_14 = arith.constant dense<0.000000e+00> : vector<4x8x8xf32>
    %44 = tpu.matmul %38, %40, %cst_14 {dimension_numbers = #tpu.dot_dimension_numbers<[2], [2], [1], [1], [0, 0, 0, 1, 1, 1], [0], [0]>} : vector<4x8x16xf32>, vector<4x8x16xf32>, vector<4x8x8xf32> -> vector<4x8x8xf32>
    %cst_15 = arith.constant dense<0xFF800000> : vector<4x8xf32>
    %45 = vector.multi_reduction <maximumf>, %44, %cst_15 [2] : vector<4x8x8xf32> to vector<4x8xf32>
    %46 = vector.shape_cast %45 : vector<4x8xf32> to vector<4x8x1xf32>
    %47 = vector.broadcast %46 : vector<4x8x1xf32> to vector<4x8x8xf32>
    %48 = arith.subf %44, %47 : vector<4x8x8xf32>
    %49 = math.exp %48 : vector<4x8x8xf32>
    %cst_16 = arith.constant dense<0.000000e+00> : vector<4x8xf32>
    %50 = vector.multi_reduction <add>, %49, %cst_16 [2] : vector<4x8x8xf32> to vector<4x8xf32>
    %51 = vector.shape_cast %50 : vector<4x8xf32> to vector<4x8x1xf32>
    %52 = arith.truncf %49 : vector<4x8x8xf32> to vector<4x8x8xbf16>
    %cst_17 = arith.constant dense<0.000000e+00> : vector<4x8x16xf32>
    %53 = tpu.matmul %52, %43, %cst_17 {dimension_numbers = #tpu.dot_dimension_numbers<[2], [1], [1], [2], [0, 0, 0, 1, 1, 2], [0], [0]>} : vector<4x8x8xbf16>, vector<4x8x16xbf16>, vector<4x8x16xf32> -> vector<4x8x16xf32>
    %54 = tpu.reciprocal %51 : vector<4x8x1xf32> -> vector<4x8x1xf32>
    %55 = vector.broadcast %54 : vector<4x8x1xf32> to vector<4x8x16xf32>
    %56 = arith.mulf %53, %55 : vector<4x8x16xf32>
    %57 = vector.shape_cast %56 : vector<4x8x16xf32> to vector<32x16xf32>
    %58 = arith.truncf %57 : vector<32x16xf32> to vector<32x16xbf16>
    %59 = arith.index_cast %c1_i32 : i32 to index
    %c0_18 = arith.constant 0 : index
    %c0_19 = arith.constant 0 : index
    %60 = vector.load %arg3[%59, %c0_18, %c0_19] : memref<4x16x32xbf16, #tpu.memory_space<vmem>>, vector<1x16x32xbf16>
    %61 = vector.shape_cast %60 : vector<1x16x32xbf16> to vector<16x32xbf16>
    %cst_20 = arith.constant dense<0.000000e+00> : vector<32x32xf32>
    %62 = tpu.matmul %58, %61, %cst_20 {dimension_numbers = #tpu.dot_dimension_numbers<[1], [0], [0], [1], [0, 0, 1, 1], [], []>} : vector<32x16xbf16>, vector<16x32xbf16>, vector<32x32xf32> -> vector<32x32xf32>
    %63 = arith.addf %32, %62 : vector<32x32xf32>
    %c2_i32 = arith.constant 2 : i32
    %64 = arith.index_cast %c2_i32 : i32 to index
    %c0_21 = arith.constant 0 : index
    %c0_22 = arith.constant 0 : index
    %65 = vector.load %arg2[%64, %c0_21, %c0_22] : memref<4x32x48xbf16, #tpu.memory_space<vmem>>, vector<1x32x48xbf16>
    %66 = vector.shape_cast %65 : vector<1x32x48xbf16> to vector<32x48xbf16>
    %cst_23 = arith.constant dense<0.000000e+00> : vector<32x48xf32>
    %67 = tpu.matmul %0, %66, %cst_23 {dimension_numbers = #tpu.dot_dimension_numbers<[1], [0], [0], [1], [0, 0, 1, 1], [], []>} : vector<32x32xbf16>, vector<32x48xbf16>, vector<32x48xf32> -> vector<32x48xf32>
    %68 = vector.extract_strided_slice %67 {offsets = [0, 0], sizes = [32, 16], strides = [1, 1]} : vector<32x48xf32> to vector<32x16xf32>
    %69 = vector.shape_cast %68 : vector<32x16xf32> to vector<4x8x16xf32>
    %70 = vector.extract_strided_slice %67 {offsets = [0, 16], sizes = [32, 16], strides = [1, 1]} : vector<32x48xf32> to vector<32x16xf32>
    %71 = vector.shape_cast %70 : vector<32x16xf32> to vector<4x8x16xf32>
    %72 = vector.extract_strided_slice %67 {offsets = [0, 32], sizes = [32, 16], strides = [1, 1]} : vector<32x48xf32> to vector<32x16xf32>
    %73 = vector.shape_cast %72 : vector<32x16xf32> to vector<4x8x16xf32>
    %74 = arith.truncf %73 : vector<4x8x16xf32> to vector<4x8x16xbf16>
    %cst_24 = arith.constant dense<0.000000e+00> : vector<4x8x8xf32>
    %75 = tpu.matmul %69, %71, %cst_24 {dimension_numbers = #tpu.dot_dimension_numbers<[2], [2], [1], [1], [0, 0, 0, 1, 1, 1], [0], [0]>} : vector<4x8x16xf32>, vector<4x8x16xf32>, vector<4x8x8xf32> -> vector<4x8x8xf32>
    %cst_25 = arith.constant dense<0xFF800000> : vector<4x8xf32>
    %76 = vector.multi_reduction <maximumf>, %75, %cst_25 [2] : vector<4x8x8xf32> to vector<4x8xf32>
    %77 = vector.shape_cast %76 : vector<4x8xf32> to vector<4x8x1xf32>
    %78 = vector.broadcast %77 : vector<4x8x1xf32> to vector<4x8x8xf32>
    %79 = arith.subf %75, %78 : vector<4x8x8xf32>
    %80 = math.exp %79 : vector<4x8x8xf32>
    %cst_26 = arith.constant dense<0.000000e+00> : vector<4x8xf32>
    %81 = vector.multi_reduction <add>, %80, %cst_26 [2] : vector<4x8x8xf32> to vector<4x8xf32>
    %82 = vector.shape_cast %81 : vector<4x8xf32> to vector<4x8x1xf32>
    %83 = arith.truncf %80 : vector<4x8x8xf32> to vector<4x8x8xbf16>
    %cst_27 = arith.constant dense<0.000000e+00> : vector<4x8x16xf32>
    %84 = tpu.matmul %83, %74, %cst_27 {dimension_numbers = #tpu.dot_dimension_numbers<[2], [1], [1], [2], [0, 0, 0, 1, 1, 2], [0], [0]>} : vector<4x8x8xbf16>, vector<4x8x16xbf16>, vector<4x8x16xf32> -> vector<4x8x16xf32>
    %85 = tpu.reciprocal %82 : vector<4x8x1xf32> -> vector<4x8x1xf32>
    %86 = vector.broadcast %85 : vector<4x8x1xf32> to vector<4x8x16xf32>
    %87 = arith.mulf %84, %86 : vector<4x8x16xf32>
    %88 = vector.shape_cast %87 : vector<4x8x16xf32> to vector<32x16xf32>
    %89 = arith.truncf %88 : vector<32x16xf32> to vector<32x16xbf16>
    %90 = arith.index_cast %c2_i32 : i32 to index
    %c0_28 = arith.constant 0 : index
    %c0_29 = arith.constant 0 : index
    %91 = vector.load %arg3[%90, %c0_28, %c0_29] : memref<4x16x32xbf16, #tpu.memory_space<vmem>>, vector<1x16x32xbf16>
    %92 = vector.shape_cast %91 : vector<1x16x32xbf16> to vector<16x32xbf16>
    %cst_30 = arith.constant dense<0.000000e+00> : vector<32x32xf32>
    %93 = tpu.matmul %89, %92, %cst_30 {dimension_numbers = #tpu.dot_dimension_numbers<[1], [0], [0], [1], [0, 0, 1, 1], [], []>} : vector<32x16xbf16>, vector<16x32xbf16>, vector<32x32xf32> -> vector<32x32xf32>
    %94 = arith.addf %63, %93 : vector<32x32xf32>
    %c3_i32 = arith.constant 3 : i32
    %95 = arith.index_cast %c3_i32 : i32 to index
    %c0_31 = arith.constant 0 : index
    %c0_32 = arith.constant 0 : index
    %96 = vector.load %arg2[%95, %c0_31, %c0_32] : memref<4x32x48xbf16, #tpu.memory_space<vmem>>, vector<1x32x48xbf16>
    %97 = vector.shape_cast %96 : vector<1x32x48xbf16> to vector<32x48xbf16>
    %cst_33 = arith.constant dense<0.000000e+00> : vector<32x48xf32>
    %98 = tpu.matmul %0, %97, %cst_33 {dimension_numbers = #tpu.dot_dimension_numbers<[1], [0], [0], [1], [0, 0, 1, 1], [], []>} : vector<32x32xbf16>, vector<32x48xbf16>, vector<32x48xf32> -> vector<32x48xf32>
    %99 = vector.extract_strided_slice %98 {offsets = [0, 0], sizes = [32, 16], strides = [1, 1]} : vector<32x48xf32> to vector<32x16xf32>
    %100 = vector.shape_cast %99 : vector<32x16xf32> to vector<4x8x16xf32>
    %101 = vector.extract_strided_slice %98 {offsets = [0, 16], sizes = [32, 16], strides = [1, 1]} : vector<32x48xf32> to vector<32x16xf32>
    %102 = vector.shape_cast %101 : vector<32x16xf32> to vector<4x8x16xf32>
    %103 = vector.extract_strided_slice %98 {offsets = [0, 32], sizes = [32, 16], strides = [1, 1]} : vector<32x48xf32> to vector<32x16xf32>
    %104 = vector.shape_cast %103 : vector<32x16xf32> to vector<4x8x16xf32>
    %105 = arith.truncf %104 : vector<4x8x16xf32> to vector<4x8x16xbf16>
    %cst_34 = arith.constant dense<0.000000e+00> : vector<4x8x8xf32>
    %106 = tpu.matmul %100, %102, %cst_34 {dimension_numbers = #tpu.dot_dimension_numbers<[2], [2], [1], [1], [0, 0, 0, 1, 1, 1], [0], [0]>} : vector<4x8x16xf32>, vector<4x8x16xf32>, vector<4x8x8xf32> -> vector<4x8x8xf32>
    %cst_35 = arith.constant dense<0xFF800000> : vector<4x8xf32>
    %107 = vector.multi_reduction <maximumf>, %106, %cst_35 [2] : vector<4x8x8xf32> to vector<4x8xf32>
    %108 = vector.shape_cast %107 : vector<4x8xf32> to vector<4x8x1xf32>
    %109 = vector.broadcast %108 : vector<4x8x1xf32> to vector<4x8x8xf32>
    %110 = arith.subf %106, %109 : vector<4x8x8xf32>
    %111 = math.exp %110 : vector<4x8x8xf32>
    %cst_36 = arith.constant dense<0.000000e+00> : vector<4x8xf32>
    %112 = vector.multi_reduction <add>, %111, %cst_36 [2] : vector<4x8x8xf32> to vector<4x8xf32>
    %113 = vector.shape_cast %112 : vector<4x8xf32> to vector<4x8x1xf32>
    %114 = arith.truncf %111 : vector<4x8x8xf32> to vector<4x8x8xbf16>
    %cst_37 = arith.constant dense<0.000000e+00> : vector<4x8x16xf32>
    %115 = tpu.matmul %114, %105, %cst_37 {dimension_numbers = #tpu.dot_dimension_numbers<[2], [1], [1], [2], [0, 0, 0, 1, 1, 2], [0], [0]>} : vector<4x8x8xbf16>, vector<4x8x16xbf16>, vector<4x8x16xf32> -> vector<4x8x16xf32>
    %116 = tpu.reciprocal %113 : vector<4x8x1xf32> -> vector<4x8x1xf32>
    %117 = vector.broadcast %116 : vector<4x8x1xf32> to vector<4x8x16xf32>
    %118 = arith.mulf %115, %117 : vector<4x8x16xf32>
    %119 = vector.shape_cast %118 : vector<4x8x16xf32> to vector<32x16xf32>
    %120 = arith.truncf %119 : vector<32x16xf32> to vector<32x16xbf16>
    %121 = arith.index_cast %c3_i32 : i32 to index
    %c0_38 = arith.constant 0 : index
    %c0_39 = arith.constant 0 : index
    %122 = vector.load %arg3[%121, %c0_38, %c0_39] : memref<4x16x32xbf16, #tpu.memory_space<vmem>>, vector<1x16x32xbf16>
    %123 = vector.shape_cast %122 : vector<1x16x32xbf16> to vector<16x32xbf16>
    %cst_40 = arith.constant dense<0.000000e+00> : vector<32x32xf32>
    %124 = tpu.matmul %120, %123, %cst_40 {dimension_numbers = #tpu.dot_dimension_numbers<[1], [0], [0], [1], [0, 0, 1, 1], [], []>} : vector<32x16xbf16>, vector<16x32xbf16>, vector<32x32xf32> -> vector<32x32xf32>
    %125 = arith.addf %94, %124 : vector<32x32xf32>
    %c4_i32 = arith.constant 4 : i32
    %c0_41 = arith.constant 0 : index
    %c0_42 = arith.constant 0 : index
    %126 = vector.load %arg4[%c0_41, %c0_42] : memref<32x32xf32, #tpu.memory_space<vmem>>, vector<32x32xf32>
    tpu.vector_store %arg4[%c0_41, %c0_42], %125 {strides = array<i32>} : memref<32x32xf32, #tpu.memory_space<vmem>>, vector<32x32xf32>,
    return
  }
  func.func @transform_0(%arg0: i32) -> (i32, i32) {
    %c0_i32 = arith.constant 0 : i32
    %c0_i32_0 = arith.constant 0 : i32
    return %arg0, %c0_i32 : i32, i32
  }
  func.func @transform_1(%arg0: i32) -> (i32, i32, i32) {
    %c0_i32 = arith.constant 0 : i32
    %c0_i32_0 = arith.constant 0 : i32
    %c0_i32_1 = arith.constant 0 : i32
    %c0_i32_2 = arith.constant 0 : i32
    return %c0_i32, %c0_i32_0, %c0_i32_1 : i32, i32, i32
  }
  func.func @transform_2(%arg0: i32) -> (i32, i32, i32) {
    %c0_i32 = arith.constant 0 : i32
    %c0_i32_0 = arith.constant 0 : i32
    %c0_i32_1 = arith.constant 0 : i32
    %c0_i32_2 = arith.constant 0 : i32
    return %c0_i32, %c0_i32_0, %c0_i32_1 : i32, i32, i32
  }
  func.func @transform_3(%arg0: i32) -> (i32, i32) {
    %c0_i32 = arith.constant 0 : i32
    %c0_i32_0 = arith.constant 0 : i32
    return %arg0, %c0_i32 : i32, i32
  }
}

</mosaic_0001>

<bundles_post_ra>
// kernel: attention_forward.1
= control target key start
LH: loop header
LB: loop body
LE: loop exit
PB: predicated region body
PF: predicated region fallthrough
CT: control target
= control target key end

     0   :  { %s2298_s0 = inlined_call_operand.vmem [shape: bf16[32,32], index: 0, kind: input, shape index: {}]   ;;  %s2299_s1 = inlined_call_operand.vmem [shape: bf16[4,32,48], index: 1, kind: input, shape index: {}]   ;;  %s2300_s2 = inlined_call_operand.vmem [shape: bf16[4,16,32], index: 2, kind: input, shape index: {}]   ;;  %s2301_s3 = inlined_call_operand.hbm [shape: f32[32,32], index: 3, kind: output, shape index: {}]  }
   0x1   :  { %v1729_v0 = vld [vmem:[%s2299_s1 + $0x8] sm:$0xff] }
   0x2   :  { %8 = vsyncpa [#allocation3], 0  ;;  %59 = vmatpush.bf16.msra.mxu0 %v1729_v0  ;;  %v1728_v1 = vld [vmem:[%s2299_s1] sm:$0xff]  ;;  %vm46_vm0 = vcmask 261120   ;;  %v1876_v3 = vld [vmem:[%s2298_s0 + $0x8] sm:$0xff]  ;;  %s1835_s20 = smov 112  }
   0x3   :  { %v1869_v2 = vld [vmem:[%s2298_s0] sm:$0xff]  ;;  %s1836_s21 = smov 96   ;;  %vm79_vm1 = vcmask 130048   ;;  %v1732_v10 = vld [vmem:[%s2299_s1 + $0x18] sm:$0xff]  ;;  %v1731_v12 = vld [vmem:[%s2299_s1 + $0x10] sm:$0xff]  ;;  %vm185_vm2 = vcmask 64512  }
   0x4   :  { %vm234_vm3 = vcmask 1043456   ;;  %s1576_s16 = sshll.u32 %s2301_s3, 4  ;;  %s1838_s17 = smov 128   ;;  %s1577_s16 = int_to_ptr.hbm [resolvable:$true] %s1576_s16 }
   0x5   :  { %s1839_s18 = smov 8  }
   0x6   :  { %60 = vmatpush.bf16.msra.mxu0 %v1728_v1 }
   0x9   :  { %1604 = vmatmul.msk.bf16.vlgmr.msra.gmra.mxu0 %vm46_vm0, %v1869_v2 }
  0x19   :  { %1605 = vmatmul.msk.bf16.gmra.mxu0 %vm46_vm0, %v1876_v3 }
  0x86   :  { %v62_v4 = vpop.f32.mrf.mxu0 }
  0x87   :  { %v72_v17 = vpack.c.bf16 %v62_v4, %v62_v4 }
  0x89   :  { %v227_v19 = vunpack.c.l.b16 %v72_v17 }
  0x8b   :  { %v228_v21 = vpack.c.b16 %v227_v19, %v227_v19 }
  0x8e   :  { %v1880_v5 = vpop.f32.mrf.mxu0 }
  0x96   :  { %v67_v6 = vpop.f32.mrf.mxu0 }
  0x97   :  { %132 = vrot.lane.b32.xlu0 %v67_v6, %s1835_s20  ;;  %v74_v7 = vpack.c.bf16 %v67_v6, %v67_v6 }
  0x99   :  { %v276_v8 = vunpack.c.l.b16 %v74_v7 }
  0x9b   :  { %v277_v9 = vpack.c.b16 %v276_v8, %v276_v8 }
  0x9d   :  { %278 = vrot.lane.b32.xlu2 %v277_v9, %s1836_s21 }
  0x9e   :  { %v69_v20 = vpop.f32.mrf.mxu0 }
  0x9f   :  { %77 = vrot.lane.b32.xlu0 %v62_v4, %s1835_s20  ;;  %v75_v23 = vpack.c.bf16 %v69_v20, %v69_v20 }
  0xa1   :  { %v300_v24 = vunpack.c.l.b16 %v75_v23 }
  0xa3   :  { %v301_v25 = vpack.c.b16 %v300_v24, %v300_v24 }
  0xf7   :  { %v279_v32 = vpop.permute.xlu2 %278 }
  0xf8   :  { %v284_v44 = vsel %vm234_vm3, %v279_v32, 0 }
 0x109   :  { %v133_v11 = vpop.permute.xlu0 %132 }
 0x10a   :  { %1610 = vmatpush.xpose.msk.msra.mxu3 %vm79_vm1, %v133_v11 }
 0x10d   :  { %1611 = vmatmul.msk.f32.vlgmr.msra.gmra.mxu3 %vm79_vm1, %v67_v6 }
 0x10e   :  { %410 = vmatpush.bf16.msrb.mxu3 %v1732_v10 }
 0x111   :  { %v78_v13 = vpop.permute.xlu0 %77 }
 0x112   :  { %411 = vmatpush.bf16.msrb.mxu3 %v1731_v12  ;;  %1606 = vmatpush.xpose.msk.msra.mxu1 %vm79_vm1, %v78_v13 }
 0x115   :  { %1607 = vmatmul.msk.f32.vlgmr.msra.gmra.mxu1 %vm79_vm1, %v62_v4  ;;  %1630 = vmatmul.msk.bf16.vlgmr.msrb.gmra.mxu3 %vm46_vm0, %v1869_v2  ;;  %v73_v4 = vpack.c.bf16 %v1880_v5, %v1880_v5 }
 0x117   :  { %v252_v7 = vunpack.c.l.b16 %v73_v4 }
 0x119   :  { %v253_v9 = vpack.c.b16 %v252_v7, %v252_v7 }
 0x125   :  { %1631 = vmatmul.msk.bf16.gmra.mxu3 %vm46_vm0, %v1876_v3 }
 0x190   :  { %v155_v14 = vpop.f32.mrf.mxu3 }
 0x191   :  { %v192_v15 = vsel %vm185_vm2, %v155_v14, -inf }
 0x192   :  { %193 = vmax.xlane.f32.xlu1 %v192_v15  ;;  %v101_v27 = vpop.f32.mrf.mxu1 }
 0x193   :  { %v186_v28 = vsel %vm185_vm2, %v101_v27, -inf }
 0x198   :  { %v1900_v16 = vpop.f32.mrf.mxu3 }
 0x199   :  { %428 = vrot.lane.b32.xlu2 %v1900_v16, %s1835_s20 }
 0x1a0   :  { %v1904_v18 = vpop.f32.mrf.mxu3 }
 0x1a1   :  { %105 = vrot.lane.b32.xlu2 %v1880_v5, %s1835_s20 }
 0x1a8   :  { %v418_v22 = vpop.f32.mrf.mxu3 }
 0x1a9   :  { %482 = vrot.lane.b32.xlu0 %v418_v22, %s1835_s20  ;;  %229 = vrot.lane.b32.xlu2 %v228_v21, %s1836_s21  ;;  %v425_v29 = vpack.c.bf16 %v418_v22, %v418_v22 }
 0x1ab   :  { %159 = vrot.lane.b32.xlu1 %v69_v20, %s1835_s20  ;;  %v624_v30 = vunpack.c.l.b16 %v425_v29  ;;  %v1735_v29 = vld [vmem:[%s2299_s1 + $0x28] sm:$0xff] }
 0x1ad   :  { %v625_v31 = vpack.c.b16 %v624_v30, %v624_v30  ;;  %v1734_v30 = vld [vmem:[%s2299_s1 + $0x20] sm:$0xff] }
 0x1b0   :  { %v1912_v26 = vpop.f32.mrf.mxu3 }
 0x1b1   :  { %v426_v33 = vpack.c.bf16 %v1912_v26, %v1912_v26 }
 0x1b3   :  { %302 = vrot.lane.b32.xlu1 %v301_v25, %s1836_s21  ;;  %v648_v34 = vunpack.c.l.b16 %v426_v33 }
 0x1b5   :  { %v649_v36 = vpack.c.b16 %v648_v34, %v648_v34 }
 0x1bb   :  { %509 = vrot.lane.b32.xlu1 %v1912_v26, %s1835_s20 }
 0x1d3   :  { %187 = vmax.xlane.f32.xlu0 %v186_v28 }
 0x1e7   :  { %626 = vrot.lane.b32.xlu0 %v625_v31, %s1836_s21 }
 0x1ef   :  { %455 = vrot.lane.b32.xlu0 %v1904_v18, %s1835_s20 }
 0x1f3   :  { %v429_v35 = vpop.permute.xlu2 %428 }
 0x1f7   :  { %650 = vrot.lane.b32.xlu0 %v649_v36, %s1836_s21 }
 0x1fb   :  { %v106_v37 = vpop.permute.xlu2 %105 }
 0x1fc   :  { %1608 = vmatpush.xpose.msk.msra.mxu2 %vm79_vm1, %v106_v37 }
 0x1ff   :  { %1609 = vmatmul.msk.f32.vlgmr.msra.gmra.mxu2 %vm79_vm1, %v1880_v5 }
 0x203   :  { %v230_v38 = vpop.permute.xlu2 %229 }
 0x204   :  { %v236_v39 = vsel %vm234_vm3, %v230_v38, 0 }
 0x205   :  { %245 = vmatpush.bf16.msrb.mxu2 %v236_v39  ;;  %v194_v40 = vpop.xlane.xlu1 %193 }
 0x206   :  { %v200_v41 = vsub.f32 %v155_v14, %v194_v40 }
 0x208   :  { %v206_v42 = vmul.f32 1.442695, %v200_v41 }
 0x20a   :  { %1745 = vpow2.f32 %v206_v42 }
 0x210   :  { %v1931_v45 = vpop.eup %1745 }
 0x211   :  { %v224_v48 = vpack.c.bf16 %v1931_v45, %v1931_v45 }
 0x21b   :  { %v483_v49 = vpop.permute.xlu0 %482 }
 0x21d   :  { %v160_v43 = vpop.permute.xlu1 %159 }
 0x21e   :  { %1612 = vmatpush.xpose.msk.msrb.mxu1 %vm79_vm1, %v160_v43  ;;  %v423_v43 = vpack.c.bf16 %v1900_v16, %v1900_v16 }
 0x221   :  { %1613 = vmatmul.msk.f32.vlgmr.msrb.gmra.mxu1 %vm79_vm1, %v69_v20 }
 0x222   :  { %293 = vmatpush.bf16.msra.mxu1 %v284_v44 }
 0x225   :  { %v303_v46 = vpop.permute.xlu1 %302 }
 0x226   :  { %1632 = vmatpush.xpose.msk.msrb.mxu1 %vm79_vm1, %v429_v35  ;;  %v308_v47 = vsel %vm234_vm3, %v303_v46, 0  ;;  %v576_v46 = vunpack.c.l.b16 %v423_v43 }
 0x227   :  { %317 = vmatpush.bf16.msra.mxu2 %v308_v47  ;;  %v424_v47 = vpack.c.bf16 %v1904_v18, %v1904_v18 }
 0x229   :  { %1616 = vmatmul.msk.bf16.vlgmr.msra.gmra.mxu1 %vm185_vm2, %v224_v48  ;;  %v577_v48 = vpack.c.b16 %v576_v46, %v576_v46 }
 0x22a   :  { %1636 = vmatpush.xpose.msk.msra.mxu1 %vm79_vm1, %v483_v49 }
 0x22d   :  { %v510_v55 = vpop.permute.xlu1 %509 }
 0x239   :  { %1633 = vmatmul.msk.f32.vlgmr.msrb.gmra.mxu1 %vm79_vm1, %v1900_v16 }
 0x241   :  { %1637 = vmatmul.msk.f32.vlgmr.msra.gmra.mxu1 %vm79_vm1, %v418_v22 }
 0x246   :  { %v188_v50 = vpop.xlane.xlu0 %187 }
 0x247   :  { %v198_v51 = vsub.f32 %v101_v27, %v188_v50  ;;  %v600_v50 = vunpack.c.l.b16 %v424_v47 }
 0x249   :  { %v202_v52 = vmul.f32 1.442695, %v198_v51  ;;  %v601_v51 = vpack.c.b16 %v600_v50, %v600_v50 }
 0x24b   :  { %1747 = vpow2.f32 %v202_v52 }
 0x251   :  { %v1941_v53 = vpop.eup %1747 }
 0x252   :  { %v222_v54 = vpack.c.bf16 %v1941_v53, %v1941_v53 }
 0x254   :  { %1614 = vmatmul.msk.bf16.vlgmr.msrb.gmra.mxu2 %vm185_vm2, %v222_v54 }
 0x255   :  { %1638 = vmatpush.xpose.msk.msrb.mxu2 %vm79_vm1, %v510_v55 }
 0x259   :  { %v627_v56 = vpop.permute.xlu0 %626 }
 0x25a   :  { %v632_v23 = vsel %vm234_vm3, %v627_v56, 0 }
 0x261   :  { %v456_v57 = vpop.permute.xlu0 %455 }
 0x269   :  { %v651_v58 = vpop.permute.xlu0 %650 }
 0x26a   :  { %v656_v59 = vsel %vm234_vm3, %v651_v58, 0 }
 0x26b   :  { %665 = vmatpush.bf16.msra.mxu3 %v656_v59 }
 0x282   :  { %v128_v62 = vpop.f32.mrf.mxu2 }
 0x283   :  { %v189_v0 = vsel %vm185_vm2, %v128_v62, -inf }
 0x29e   :  { %v182_v60 = vpop.f32.mrf.mxu1 }
 0x29f   :  { %v195_v61 = vsel %vm185_vm2, %v182_v60, -inf }
 0x2a0   :  { %196 = vmax.xlane.f32.xlu2 %v195_v61 }
 0x2a6   :  { %v1949_v63 = vpop.f32.mrf.mxu1 }
 0x2a8   :  { %190 = vmax.xlane.f32.xlu2 %v189_v0 }
 0x2ae   :  { %v297_v1 = vpop.f32.mrf.mxu1 }
 0x2b6   :  { %v1954_v6 = vpop.f32.mrf.mxu1 }
 0x2b7   :  { %v535_v13 = vsel %vm185_vm2, %v1954_v6, -inf }
 0x2be   :  { %v505_v8 = vpop.f32.mrf.mxu1 }
 0x2bf   :  { %v541_v10 = vsel %vm185_vm2, %v505_v8, -inf }
 0x2c0   :  { %254 = vrot.lane.b32.xlu2 %v253_v9, %s1836_s21  ;;  %542 = vmax.xlane.f32.xlu1 %v541_v10  ;;  %v210_v10 = vsel %vm185_vm2, %v1941_v53, 0.0 }
 0x2d7   :  { %v1958_v11 = vpop.f32.mrf.mxu2 }
 0x2df   :  { %v249_v12 = vpop.f32.mrf.mxu2 }
 0x2e9   :  { %536 = vmax.xlane.f32.xlu2 %v535_v13 }
 0x313   :  { %v197_v14 = vpop.xlane.xlu2 %196 }
 0x314   :  { %v201_v15 = vsub.f32 %v182_v60, %v197_v14 }
 0x316   :  { %v208_v5 = vmul.f32 1.442695, %v201_v15  ;;  %v216_v15 = vsel %vm185_vm2, %v1931_v45, 0.0 }
 0x318   :  { %1749 = vpow2.f32 %v208_v5 }
 0x31b   :  { %v191_v17 = vpop.xlane.xlu2 %190 }
 0x31c   :  { %v199_v19 = vsub.f32 %v128_v62, %v191_v17 }
 0x31e   :  { %v1962_v20 = vpop.eup %1749  ;;  %v204_v21 = vmul.f32 1.442695, %v199_v19 }
 0x31f   :  { %v225_v22 = vpack.c.bf16 %v1962_v20, %v1962_v20  ;;  %v219_v5 = vsel %vm185_vm2, %v1962_v20, 0.0 }
 0x320   :  { %1751 = vpow2.f32 %v204_v21 }
 0x321   :  { %1617 = vmatmul.msk.bf16.vlgmr.msra.gmra.mxu2 %vm185_vm2, %v225_v22 }
 0x322   :  { %641 = vmatpush.bf16.msra.mxu2 %v632_v23 }
 0x323   :  { %v255_v24 = vpop.permute.xlu2 %254 }
 0x324   :  { %v260_v25 = vsel %vm234_vm3, %v255_v24, 0 }
 0x325   :  { %269 = vmatpush.bf16.msrb.mxu0 %v260_v25 }
 0x326   :  { %v1969_v27 = vpop.eup %1751 }
 0x327   :  { %v223_v28 = vpack.c.bf16 %v1969_v27, %v1969_v27 }
 0x329   :  { %1634 = vmatpush.xpose.msk.msra.mxu0 %vm79_vm1, %v456_v57 }
 0x32a   :  { %1615 = vmatmul.msk.bf16.vlgmr.msrb.gmra.mxu0 %vm185_vm2, %v223_v28  ;;  %v213_v28 = vsel %vm185_vm2, %v1969_v27, 0.0  ;;  %v1733_v27 = vld [vmem:[%s2300_s2 + $0x8] sm:$0xff] }
 0x331   :  { %1639 = vmatmul.msk.f32.vlgmr.msrb.gmra.mxu2 %vm79_vm1, %v1912_v26 }
 0x332   :  { %821 = vmatpush.bf16.msrb.mxu2 %v1735_v29 }
 0x333   :  { %v543_v31 = vpop.xlane.xlu1 %542 }
 0x334   :  { %v549_v32 = vsub.f32 %v505_v8, %v543_v31 }
 0x336   :  { %v555_v33 = vmul.f32 1.442695, %v549_v32  ;;  %822 = vmatpush.bf16.msrb.mxu2 %v1734_v30 }
 0x338   :  { %1753 = vpow2.f32 %v555_v33 }
 0x33a   :  { %1635 = vmatmul.msk.f32.vlgmr.msra.gmra.mxu0 %vm79_vm1, %v1904_v18 }
 0x33e   :  { %v1754_v34 = vpop.eup %1753 }
 0x33f   :  { %v573_v35 = vpack.c.bf16 %v1754_v34, %v1754_v34  ;;  %v565_v58 = vsel %vm185_vm2, %v1754_v34, 0.0 }
 0x341   :  { %1642 = vmatmul.msk.bf16.vlgmr.msra.gmra.mxu2 %vm185_vm2, %v573_v35 }
 0x351   :  { %1670 = vmatmul.msk.bf16.vlgmr.msrb.gmra.mxu2 %vm46_vm0, %v1869_v2 }
 0x35c   :  { %v537_v16 = vpop.xlane.xlu2 %536 }
 0x35d   :  { %v547_v52 = vsub.f32 %v1954_v6, %v537_v16 }
 0x35f   :  { %v551_v54 = vmul.f32 1.442695, %v547_v52 }
 0x361   :  { %1671 = vmatmul.msk.bf16.gmra.mxu2 %vm46_vm0, %v1876_v3  ;;  %1755 = vpow2.f32 %v551_v54 }
 0x367   :  { %v1756_v56 = vpop.eup %1755 }
 0x368   :  { %v559_v57 = vsel %vm185_vm2, %v1756_v56, 0.0  ;;  %v571_v12 = vpack.c.bf16 %v1756_v56, %v1756_v56 }
 0x3a4   :  { %v1990_v26 = vpop.f32.mrf.mxu2 }
 0x3a7   :  { %v1992_v36 = vpop.f32.mrf.mxu0 }
 0x3ac   :  { %v321_v37 = vpop.f32.mrf.mxu2 }
 0x3af   :  { %v273_v38 = vpop.f32.mrf.mxu0 }
 0x3b4   :  { %v532_v39 = vpop.f32.mrf.mxu2 }
 0x3b5   :  { %v544_v40 = vsel %vm185_vm2, %v532_v39, -inf }
 0x3b6   :  { %545 = vmax.xlane.f32.xlu1 %v544_v40 }
 0x3b7   :  { %v478_v55 = vpop.f32.mrf.mxu0 }
 0x3b8   :  { %v538_v18 = vsel %vm185_vm2, %v478_v55, -inf }
 0x3c4   :  { %v1995_v41 = vpop.f32.mrf.mxu2 }
 0x3cc   :  { %v645_v42 = vpop.f32.mrf.mxu2 }
 0x3d4   :  { %v1999_v44 = vpop.f32.mrf.mxu2 }
 0x3d5   :  { %839 = vrot.lane.b32.xlu1 %v1999_v44, %s1835_s20 }
 0x3dc   :  { %v2005_v49 = vpop.f32.mrf.mxu2 }
 0x3dd   :  { %578 = vrot.lane.b32.xlu1 %v577_v48, %s1836_s21  ;;  %866 = vrot.lane.b32.xlu0 %v2005_v49, %s1835_s20  ;;  %v835_v33 = vpack.c.bf16 %v2005_v49, %v2005_v49 }
 0x3df   :  { %v1011_v34 = vunpack.c.l.b16 %v835_v33 }
 0x3e1   :  { %v1012_v38 = vpack.c.b16 %v1011_v34, %v1011_v34 }
 0x3e4   :  { %v2015_v59 = vpop.f32.mrf.mxu2 }
 0x3e5   :  { %602 = vrot.lane.b32.xlu1 %v601_v51, %s1836_s21  ;;  %v836_v37 = vpack.c.bf16 %v2015_v59, %v2015_v59 }
 0x3ec   :  { %v2017_v60 = vpop.f32.mrf.mxu2 }
 0x407   :  { %539 = vmax.xlane.f32.xlu0 %v538_v18 }
 0x40f   :  { %560 = vadd.xlane.f32.xlu1 %v559_v57  ;;  %566 = vadd.xlane.f32.xlu0 %v565_v58 }
 0x428   :  { %920 = vrot.lane.b32.xlu1 %v2017_v60, %s1835_s20 }
 0x429   :  { %v546_v61 = vpop.xlane.xlu1 %545 }
 0x42a   :  { %v550_v62 = vsub.f32 %v532_v39, %v546_v61  ;;  %v1035_v39 = vunpack.c.l.b16 %v836_v37 }
 0x42c   :  { %v557_v0 = vmul.f32 1.442695, %v550_v62  ;;  %v1036_v42 = vpack.c.b16 %v1035_v39, %v1035_v39 }
 0x42e   :  { %1757 = vpow2.f32 %v557_v0 }
 0x434   :  { %v1758_v1 = vpop.eup %1757 }
 0x435   :  { %v574_v4 = vpack.c.bf16 %v1758_v1, %v1758_v1  ;;  %v568_v24 = vsel %vm185_vm2, %v1758_v1, 0.0 }
 0x437   :  { %1643 = vmatmul.msk.bf16.vlgmr.msra.gmra.mxu3 %vm185_vm2, %v574_v4 }
 0x447   :  { %v840_v6 = vpop.permute.xlu1 %839 }
 0x448   :  { %1672 = vmatpush.xpose.msk.msrb.mxu3 %vm79_vm1, %v840_v6 }
 0x44b   :  { %1673 = vmatmul.msk.f32.vlgmr.msrb.gmra.mxu3 %vm79_vm1, %v1999_v44 }
 0x44f   :  { %v867_v7 = vpop.permute.xlu0 %866  ;;  %v579_v8 = vpop.permute.xlu1 %578 }
 0x450   :  { %v584_v9 = vsel %vm234_vm3, %v579_v8, 0  ;;  %1674 = vmatpush.xpose.msk.msra.mxu3 %vm79_vm1, %v867_v7 }
 0x451   :  { %593 = vmatpush.bf16.msrb.mxu0 %v584_v9 }
 0x452   :  { %211 = vadd.xlane.f32.xlu1 %v210_v10 }
 0x453   :  { %1675 = vmatmul.msk.f32.vlgmr.msra.gmra.mxu3 %vm79_vm1, %v2005_v49 }
 0x454   :  { %1640 = vmatmul.msk.bf16.vlgmr.msrb.gmra.mxu0 %vm185_vm2, %v571_v12 }
 0x455   :  { %755 = vmatpush.bf16.msra.mxu0 %v1733_v27 }
 0x457   :  { %v603_v13 = vpop.permute.xlu1 %602 }
 0x458   :  { %v608_v14 = vsel %vm234_vm3, %v603_v13, 0 }
 0x459   :  { %617 = vmatpush.bf16.msrb.mxu1 %v608_v14 }
 0x45a   :  { %217 = vadd.xlane.f32.xlu1 %v216_v15 }
 0x462   :  { %220 = vadd.xlane.f32.xlu1 %v219_v5 }
 0x47a   :  { %v540_v53 = vpop.xlane.xlu0 %539 }
 0x47b   :  { %v548_v17 = vsub.f32 %v478_v55, %v540_v53 }
 0x47d   :  { %v553_v19 = vmul.f32 1.442695, %v548_v17 }
 0x47f   :  { %1759 = vpow2.f32 %v553_v19 }
 0x482   :  { %v561_v35 = vpop.xlane.xlu1 %560  ;;  %v2062_v47 = vpop.xlane.xlu0 %566 }
 0x483   :  { %1761 = vrcp.f32 %v561_v35  ;;  %vm676_vm5 = vweird.f32 %v561_v35  ;;  %v680_v56 = vand.u32 2147483647, %v561_v35  ;;  %v682_v57 = vand.u32 2147483648, %v561_v35 }
 0x484   :  { %v708_v33 = vand.u32 2147483647, %v2062_v47 }
 0x485   :  { %v1760_v21 = vpop.eup %1759  ;;  %vm681_vm9 = vcmp.eq.f32.partialorder %v680_v56, 8.507059e+37  ;;  %v683_v8 = vor.u32 1.1754944e-38, %v682_v57 }
 0x486   :  { %v572_v22 = vpack.c.bf16 %v1760_v21, %v1760_v21  ;;  %v562_v23 = vsel %vm185_vm2, %v1760_v21, 0.0 }
 0x487   :  { %563 = vadd.xlane.f32.xlu2 %v562_v23 }
 0x488   :  { %1641 = vmatmul.msk.bf16.vlgmr.msrb.gmra.mxu1 %vm185_vm2, %v572_v22 }
 0x489   :  { %v1762_v43 = vpop.eup %1761 }
 0x48a   :  { %v672_v46 = vmul.f32 %v1762_v43, %v561_v35  ;;  %vm677_vm4 = vweird.f32 %v1762_v43 }
 0x48b   :  { %vm678_vm7 = vmor %vm676_vm5, %vm677_vm4  ;;  %vm704_vm4 = vweird.f32 %v2062_v47 }
 0x48c   :  { %v673_v49 = vsub.f32 1.0, %v672_v46  ;;  %v1730_v46 = vld [vmem:[%s2300_s2] sm:$0xff] }
 0x48d   :  { %786 = vmatpush.bf16.msra.mxu1 %v1730_v46 }
 0x48e   :  { %v674_v50 = vmul.f32 %v1762_v43, %v673_v49 }
 0x48f   :  { %569 = vadd.xlane.f32.xlu2 %v568_v24 }
 0x490   :  { %v675_v55 = vadd.f32 %v1762_v43, %v674_v50 }
 0x492   :  { %v679_v4 = vsel %vm678_vm7, %v1762_v43, %v675_v55  ;;  %vm709_vm7 = vcmp.eq.f32.partialorder %v708_v33, 8.507059e+37  ;;  %v1738_v33 = vld [vmem:[%s2299_s1 + $0x38] sm:$0xff] }
 0x493   :  { %v684_v15 = vsel %vm681_vm9, %v683_v8, %v679_v4 }
 0x49a   :  { %v921_v40 = vpop.permute.xlu1 %920 }
 0x49b   :  { %1678 = vmatpush.xpose.msk.msrb.mxu0 %vm79_vm1, %v921_v40 }
 0x4a7   :  { %893 = vrot.lane.b32.xlu2 %v2015_v59, %s1835_s20 }
 0x4ba   :  { %v2042_v45 = vpop.f32.mrf.mxu3 }
 0x4c2   :  { %v669_v20 = vpop.f32.mrf.mxu3 }
 0x4c5   :  { %v212_v43 = vpop.xlane.xlu1 %211 }
 0x4c6   :  { %vm328_vm9 = vweird.f32 %v212_v43  ;;  %v334_v56 = vand.u32 2147483648, %v212_v43 }
 0x4ce   :  { %v2044_v25 = vpop.f32.mrf.mxu3 }
 0x4d0   :  { %214 = vadd.xlane.f32.xlu2 %v213_v28 }
 0x4d1   :  { %v595_v29 = vpop.f32.mrf.mxu0 }
 0x4d2   :  { %v727_v53 = vmul.f32 %v684_v15, %v595_v29  ;;  %v710_v29 = vand.u32 2147483648, %v2062_v47 }
 0x4d4   :  { %v711_v37 = vor.u32 1.1754944e-38, %v710_v29 }
 0x4d6   :  { %v2048_v30 = vpop.f32.mrf.mxu3 }
 0x4d7   :  { %v949_v31 = vsel %vm185_vm2, %v2048_v30, -inf }
 0x4d8   :  { %950 = vmax.xlane.f32.xlu0 %v949_v31 }
 0x4d9   :  { %v597_v32 = vpop.f32.mrf.mxu0 }
 0x4ec   :  { %1013 = vrot.lane.b32.xlu0 %v1012_v38, %s1836_s21 }
 0x4f4   :  { %1037 = vrot.lane.b32.xlu0 %v1036_v42, %s1836_s21 }
 0x4fa   :  { %v564_v48 = vpop.xlane.xlu2 %563 }
 0x4fb   :  { %1763 = vrcp.f32 %v564_v48  ;;  %v696_v61 = vand.u32 2147483648, %v564_v48  ;;  %v694_v1 = vand.u32 2147483647, %v564_v48  ;;  %vm690_vm8 = vweird.f32 %v564_v48 }
 0x4fc   :  { %1765 = vrcp.f32 %v2062_v47 }
 0x4fd   :  { %v697_v9 = vor.u32 1.1754944e-38, %v696_v61  ;;  %vm695_vm11 = vcmp.eq.f32.partialorder %v694_v1, 8.507059e+37 }
 0x501   :  { %v1764_v51 = vpop.eup %1763 }
 0x502   :  { %v686_v16 = vmul.f32 %v1764_v51, %v564_v48  ;;  %v570_v52 = vpop.xlane.xlu2 %569  ;;  %v1766_v54 = vpop.eup %1765  ;;  %vm691_vm6 = vweird.f32 %v1764_v51 }
 0x503   :  { %1767 = vrcp.f32 %v570_v52  ;;  %v700_v62 = vmul.f32 %v1766_v54, %v2062_v47  ;;  %vm692_vm10 = vmor %vm690_vm8, %vm691_vm6  ;;  %v724_v28 = vand.u32 2147483648, %v570_v52  ;;  %vm705_vm13 = vweird.f32 %v1766_v54  ;;  %v2081_v47 = vpop.xlane.xlu1 %217 }
 0x504   :  { %v687_v18 = vsub.f32 1.0, %v686_v16  ;;  %vm718_vm14 = vweird.f32 %v570_v52  ;;  %v722_v32 = vand.u32 2147483647, %v570_v52  ;;  %vm706_vm5 = vmor %vm704_vm4, %vm705_vm13  ;;  %1769 = vrcp.f32 %v212_v43 }
 0x505   :  { %v619_v58 = vpop.f32.mrf.mxu1  ;;  %v701_v10 = vsub.f32 1.0, %v700_v62  ;;  %v725_v35 = vor.u32 1.1754944e-38, %v724_v28 }
 0x506   :  { %v688_v0 = vmul.f32 %v1764_v51, %v687_v18  ;;  %vm723_vm6 = vcmp.eq.f32.partialorder %v722_v32, 8.507059e+37  ;;  %v360_v32 = vand.u32 2147483647, %v2081_v47 }
 0x507   :  { %v702_v22 = vmul.f32 %v1766_v54, %v701_v10 }
 0x508   :  { %v689_v6 = vadd.f32 %v1764_v51, %v688_v0 }
 0x509   :  { %v1768_v7 = vpop.eup %1767  ;;  %v703_v31 = vadd.f32 %v1766_v54, %v702_v22 }
 0x50a   :  { %v714_v12 = vmul.f32 %v1768_v7, %v570_v52  ;;  %v693_v13 = vsel %vm692_vm10, %v1764_v51, %v689_v6  ;;  %v894_v14 = vpop.permute.xlu2 %893  ;;  %vm719_vm12 = vweird.f32 %v1768_v7  ;;  %v1770_v48 = vpop.eup %1769 }
 0x50b   :  { %v698_v5 = vsel %vm695_vm11, %v697_v9, %v693_v13  ;;  %1676 = vmatpush.xpose.msk.msrb.mxu3 %vm79_vm1, %v894_v14  ;;  %vm720_vm15 = vmor %vm718_vm14, %vm719_vm12  ;;  %v324_v49 = vmul.f32 %v1770_v48, %v212_v43  ;;  %vm329_vm8 = vweird.f32 %v1770_v48  ;;  %v335_v9 = vor.u32 1.1754944e-38, %v334_v56 }
 0x50c   :  { %v715_v17 = vsub.f32 1.0, %v714_v12  ;;  %v728_v19 = vmul.f32 %v698_v5, %v619_v58  ;;  %vm2091_vm10 = vmor %vm328_vm9, %vm329_vm8  ;;  %v332_v58 = vand.u32 2147483647, %v212_v43  ;;  %vm356_vm8 = vweird.f32 %v2081_v47 }
 0x50d   :  { %v621_v21 = vpop.f32.mrf.mxu1 }
 0x50e   :  { %v716_v23 = vmul.f32 %v1768_v7, %v715_v17  ;;  %v731_v24 = vpack.c.bf16 %v728_v19, %v727_v53  ;;  %1677 = vmatmul.msk.f32.vlgmr.msrb.gmra.mxu3 %vm79_vm1, %v2015_v59  ;;  %v707_v59 = vsel %vm706_vm5, %v1766_v54, %v703_v31  ;;  %vm333_vm12 = vcmp.eq.f32.partialorder %v332_v58, 8.507059e+37 }
 0x50f   :  { %v712_v27 = vsel %vm709_vm7, %v711_v37, %v707_v59 }
 0x510   :  { %v717_v20 = vadd.f32 %v1768_v7, %v716_v23  ;;  %1650 = vmatmul.msk.bf16.vlgmr.msra.gmra.mxu0 %vm79_vm1, %v731_v24  ;;  %v729_v40 = vmul.f32 %v712_v27, %v1995_v41  ;;  %v325_v41 = vsub.f32 1.0, %v324_v49 }
 0x512   :  { %v721_v34 = vsel %vm720_vm15, %v1768_v7, %v717_v20  ;;  %v326_v51 = vmul.f32 %v1770_v48, %v325_v41 }
 0x513   :  { %v726_v38 = vsel %vm723_vm6, %v725_v35, %v721_v34 }
 0x514   :  { %v730_v39 = vmul.f32 %v726_v38, %v2042_v45  ;;  %v2083_v45 = vpop.xlane.xlu1 %220  ;;  %v327_v54 = vadd.f32 %v1770_v48, %v326_v51 }
 0x515   :  { %1771 = vrcp.f32 %v2083_v45  ;;  %v376_v28 = vand.u32 2147483648, %v2083_v45  ;;  %vm370_vm6 = vweird.f32 %v2083_v45 }
 0x516   :  { %v732_v42 = vpack.c.bf16 %v730_v39, %v729_v40  ;;  %v331_v1 = vsel %vm2091_vm10, %v1770_v48, %v327_v54 }
 0x517   :  { %v336_v14 = vsel %vm333_vm12, %v335_v9, %v331_v1  ;;  %v377_v35 = vor.u32 1.1754944e-38, %v376_v28 }
 0x518   :  { %v379_v21 = vmul.f32 %v336_v14, %v1958_v11  ;;  %v374_v11 = vand.u32 2147483647, %v2083_v45 }
 0x51a   :  { %vm375_vm10 = vcmp.eq.f32.partialorder %v374_v11, 8.507059e+37 }
 0x51b   :  { %v2087_v16 = vpop.eup %1771 }
 0x51c   :  { %v366_v61 = vmul.f32 %v2087_v16, %v2083_v45  ;;  %vm371_vm4 = vweird.f32 %v2087_v16 }
 0x51d   :  { %vm372_vm7 = vmor %vm370_vm6, %vm371_vm4 }
 0x51e   :  { %v367_v12 = vsub.f32 1.0, %v366_v61 }
 0x520   :  { %1651 = vmatmul.msk.bf16.gmra.mxu0 %vm79_vm1, %v732_v42  ;;  %v368_v22 = vmul.f32 %v2087_v16, %v367_v12  ;;  %v1737_v42 = vld [vmem:[%s2299_s1 + $0x30] sm:$0xff] }
 0x522   :  { %v369_v20 = vadd.f32 %v2087_v16, %v368_v22 }
 0x524   :  { %v373_v29 = vsel %vm372_vm7, %v2087_v16, %v369_v20  ;;  %v837_v16 = vpack.c.bf16 %v2017_v60, %v2017_v60 }
 0x525   :  { %v378_v39 = vsel %vm375_vm10, %v377_v35, %v373_v29 }
 0x526   :  { %v382_v46 = vmul.f32 %v378_v39, %v1990_v26 }
 0x530   :  { %1679 = vmatmul.msk.f32.vlgmr.msrb.gmra.mxu0 %vm79_vm1, %v2017_v60  ;;  %v834_v60 = vpack.c.bf16 %v1999_v44, %v1999_v44 }
 0x532   :  { %v987_v1 = vunpack.c.l.b16 %v834_v60 }
 0x543   :  { %v215_v50 = vpop.xlane.xlu2 %214 }
 0x544   :  { %1773 = vrcp.f32 %v215_v50  ;;  %v348_v4 = vand.u32 2147483648, %v215_v50  ;;  %v346_v8 = vand.u32 2147483647, %v215_v50  ;;  %vm342_vm13 = vweird.f32 %v215_v50 }
 0x545   :  { %1775 = vrcp.f32 %v2081_v47 }
 0x546   :  { %v349_v15 = vor.u32 1.1754944e-38, %v348_v4  ;;  %vm347_vm15 = vcmp.eq.f32.partialorder %v346_v8, 8.507059e+37 }
 0x54a   :  { %v1774_v52 = vpop.eup %1773 }
 0x54b   :  { %v338_v55 = vmul.f32 %v1774_v52, %v215_v50  ;;  %v2089_v18 = vpop.eup %1775  ;;  %v951_v0 = vpop.xlane.xlu0 %950  ;;  %vm343_vm11 = vweird.f32 %v1774_v52 }
 0x54c   :  { %v352_v6 = vmul.f32 %v2089_v18, %v2081_v47  ;;  %v959_v10 = vsub.f32 %v2048_v30, %v951_v0  ;;  %vm344_vm14 = vmor %vm342_vm13, %vm343_vm11  ;;  %vm357_vm5 = vweird.f32 %v2089_v18  ;;  %vm361_vm11 = vcmp.eq.f32.partialorder %v360_v32, 8.507059e+37 }
 0x54d   :  { %v339_v62 = vsub.f32 1.0, %v338_v55  ;;  %vm358_vm9 = vmor %vm356_vm8, %vm357_vm5 }
 0x54e   :  { %v353_v5 = vsub.f32 1.0, %v352_v6  ;;  %v964_v19 = vmul.f32 1.442695, %v959_v10  ;;  %v988_v6 = vpack.c.b16 %v987_v1, %v987_v1 }
 0x54f   :  { %v340_v7 = vmul.f32 %v1774_v52, %v339_v62 }
 0x550   :  { %v354_v30 = vmul.f32 %v2089_v18, %v353_v5  ;;  %1777 = vpow2.f32 %v964_v19 }
 0x551   :  { %v341_v13 = vadd.f32 %v1774_v52, %v340_v7 }
 0x552   :  { %v355_v31 = vadd.f32 %v2089_v18, %v354_v30 }
 0x553   :  { %v345_v53 = vsel %vm344_vm14, %v1774_v52, %v341_v13  ;;  %v1059_v52 = vunpack.c.l.b16 %v837_v16 }
 0x554   :  { %v350_v17 = vsel %vm347_vm15, %v349_v15, %v345_v53  ;;  %v359_v38 = vsel %vm358_vm9, %v2089_v18, %v355_v31  ;;  %v946_v15 = vsel %vm185_vm2, %v2044_v25, -inf }
 0x555   :  { %v380_v23 = vmul.f32 %v350_v17, %v1992_v36  ;;  %v362_v36 = vand.u32 2147483648, %v2081_v47 }
 0x556   :  { %v2121_v34 = vpop.eup %1777 }
 0x557   :  { %v383_v24 = vpack.c.bf16 %v380_v23, %v379_v21  ;;  %v363_v27 = vor.u32 1.1754944e-38, %v362_v36  ;;  %v983_v40 = vpack.c.bf16 %v2121_v34, %v2121_v34  ;;  %v973_v19 = vsel %vm185_vm2, %v2121_v34, 0.0 }
 0x559   :  { %1656 = vmatmul.msk.bf16.vlgmr.msra.gmra.mxu1 %vm79_vm1, %v383_v24  ;;  %v364_v43 = vsel %vm361_vm11, %v363_v27, %v359_v38 }
 0x55a   :  { %v381_v47 = vmul.f32 %v364_v43, %v1949_v63 }
 0x55c   :  { %v384_v45 = vpack.c.bf16 %v382_v46, %v381_v47 }
 0x55e   :  { %v1014_v59 = vpop.permute.xlu0 %1013 }
 0x55f   :  { %v1019_v37 = vsel %vm234_vm3, %v1014_v59, 0 }
 0x560   :  { %1028 = vmatpush.bf16.msra.mxu2 %v1019_v37 }
 0x563   :  { %1681 = vmatmul.msk.bf16.vlgmr.msra.gmra.mxu2 %vm185_vm2, %v983_v40 }
 0x564   :  { %1205 = vmatpush.bf16.msrb.mxu2 %v1738_v33 }
 0x566   :  { %v1038_v48 = vpop.permute.xlu0 %1037 }
 0x567   :  { %v1043_v49 = vsel %vm234_vm3, %v1038_v48, 0 }
 0x568   :  { %1206 = vmatpush.bf16.msrb.mxu2 %v1737_v42  ;;  %1052 = vmatpush.bf16.msra.mxu3 %v1043_v49 }
 0x569   :  { %1657 = vmatmul.msk.bf16.gmra.mxu1 %vm79_vm1, %v384_v45 }
 0x573   :  { %1704 = vmatmul.msk.bf16.vlgmr.msrb.gmra.mxu2 %vm46_vm0, %v1869_v2  ;;  %v1060_v2 = vpack.c.b16 %v1059_v52, %v1059_v52 }
 0x583   :  { %1705 = vmatmul.msk.bf16.gmra.mxu2 %vm46_vm0, %v1876_v3 }
 0x58d   :  { %v2139_v41 = vpop.f32.mrf.mxu0 }
 0x591   :  { %v916_v50 = vpop.f32.mrf.mxu3 }
 0x592   :  { %v952_v26 = vsel %vm185_vm2, %v916_v50, -inf }
 0x593   :  { %953 = vmax.xlane.f32.xlu2 %v952_v26 }
 0x595   :  { %v2142_v63 = vpop.f32.mrf.mxu0 }
 0x59d   :  { %v2144_v51 = vpop.f32.mrf.mxu0 }
 0x5a5   :  { %v2148_v54 = vpop.f32.mrf.mxu0 }
 0x5ab   :  { %1061 = vrot.lane.b32.xlu2 %v1060_v2, %s1836_s21 }
 0x5ad   :  { %v943_v3 = vpop.f32.mrf.mxu0 }
 0x5ae   :  { %v955_v55 = vsel %vm185_vm2, %v943_v3, -inf }
 0x5af   :  { %956 = vmax.xlane.f32.xlu0 %v955_v55 }
 0x5e6   :  { %v2152_v18 = vpop.f32.mrf.mxu2 }
 0x5ee   :  { %v1032_v56 = vpop.f32.mrf.mxu2 }
 0x5f6   :  { %v2154_v57 = vpop.f32.mrf.mxu2 }
 0x5f7   :  { %1223 = vrot.lane.b32.xlu0 %v2154_v57, %s1835_s20  ;;  %v1218_v52 = vpack.c.bf16 %v2154_v57, %v2154_v57 }
 0x5fe   :  { %v1210_v58 = vpop.f32.mrf.mxu2 }
 0x5ff   :  { %1250 = vrot.lane.b32.xlu0 %v1210_v58, %s1835_s20  ;;  %v1219_v22 = vpack.c.bf16 %v1210_v58, %v1210_v58 }
 0x601   :  { %v1395_v23 = vunpack.c.l.b16 %v1219_v22  ;;  %v2221_v22 = vpop.f32.mrf.mxu1 }
 0x603   :  { %v1396_v30 = vpack.c.b16 %v1395_v23, %v1395_v23 }
 0x606   :  { %v2161_v61 = vpop.f32.mrf.mxu2  ;;  %v954_v62 = vpop.xlane.xlu2 %953 }
 0x607   :  { %v960_v0 = vsub.f32 %v916_v50, %v954_v62  ;;  %1277 = vrot.lane.b32.xlu2 %v2161_v61, %s1835_s20  ;;  %v1371_v62 = vunpack.c.l.b16 %v1218_v52 }
 0x609   :  { %v966_v4 = vmul.f32 1.442695, %v960_v0 }
 0x60b   :  { %1779 = vpow2.f32 %v966_v4 }
 0x60e   :  { %v2165_v7 = vpop.f32.mrf.mxu2  ;;  %v1062_v8 = vpop.permute.xlu2 %1061 }
 0x60f   :  { %v1067_v9 = vsel %vm234_vm3, %v1062_v8, 0  ;;  %1304 = vrot.lane.b32.xlu1 %v2165_v7, %s1835_s20  ;;  %989 = vrot.lane.b32.xlu2 %v988_v6, %s1836_s21 }
 0x610   :  { %1076 = vmatpush.bf16.msra.mxu0 %v1067_v9 }
 0x611   :  { %v1780_v44 = vpop.eup %1779 }
 0x612   :  { %v984_v10 = vpack.c.bf16 %v1780_v44, %v1780_v44  ;;  %v976_v17 = vsel %vm185_vm2, %v1780_v44, 0.0  ;;  %v1372_v44 = vpack.c.b16 %v1371_v62, %v1371_v62 }
 0x614   :  { %1682 = vmatmul.msk.bf16.vlgmr.msra.gmra.mxu3 %vm185_vm2, %v984_v10 }
 0x622   :  { %v957_v12 = vpop.xlane.xlu0 %956 }
 0x623   :  { %v961_v13 = vsub.f32 %v943_v3, %v957_v12 }
 0x625   :  { %v968_v14 = vmul.f32 1.442695, %v961_v13 }
 0x627   :  { %1781 = vpow2.f32 %v968_v14 }
 0x629   :  { %947 = vmax.xlane.f32.xlu0 %v946_v15 }
 0x62d   :  { %v1782_v5 = vpop.eup %1781 }
 0x62e   :  { %v985_v53 = vpack.c.bf16 %v1782_v5, %v1782_v5  ;;  %v979_v21 = vsel %vm185_vm2, %v1782_v5, 0.0 }
 0x630   :  { %1683 = vmatmul.msk.bf16.vlgmr.msra.gmra.mxu0 %vm185_vm2, %v985_v53 }
 0x631   :  { %977 = vadd.xlane.f32.xlu0 %v976_v17 }
 0x639   :  { %974 = vadd.xlane.f32.xlu1 %v973_v19  ;;  %980 = vadd.xlane.f32.xlu0 %v979_v21  ;;  %v1220_v21 = vpack.c.bf16 %v2161_v61, %v2161_v61 }
 0x652   :  { %1397 = vrot.lane.b32.xlu1 %v1396_v30, %s1836_s21 }
 0x661   :  { %v1278_v24 = vpop.permute.xlu2 %1277 }
 0x669   :  { %v990_v20 = vpop.permute.xlu2 %989  ;;  %v1224_v28 = vpop.permute.xlu0 %1223 }
 0x66a   :  { %v995_v31 = vsel %vm234_vm3, %v990_v20, 0  ;;  %1706 = vmatpush.xpose.msk.msrb.mxu3 %vm79_vm1, %v1224_v28  ;;  %v2228_v28 = vpop.f32.mrf.mxu1 }
 0x66b   :  { %1004 = vmatpush.bf16.msrb.mxu1 %v995_v31  ;;  %v1221_v31 = vpack.c.bf16 %v2165_v7, %v2165_v7 }
 0x66d   :  { %1707 = vmatmul.msk.f32.vlgmr.msrb.gmra.mxu3 %vm79_vm1, %v2154_v57 }
 0x66e   :  { %1710 = vmatpush.xpose.msk.msra.mxu3 %vm79_vm1, %v1278_v24  ;;  %v1419_v24 = vunpack.c.l.b16 %v1220_v21 }
 0x670   :  { %v1420_v20 = vpack.c.b16 %v1419_v24, %v1419_v24 }
 0x671   :  { %v1251_v11 = vpop.permute.xlu0 %1250 }
 0x672   :  { %1708 = vmatpush.xpose.msk.msrb.mxu0 %vm79_vm1, %v1251_v11  ;;  %v1443_v11 = vunpack.c.l.b16 %v1221_v31 }
 0x675   :  { %1709 = vmatmul.msk.f32.vlgmr.msrb.gmra.mxu0 %vm79_vm1, %v1210_v58  ;;  %1711 = vmatmul.msk.f32.vlgmr.msra.gmra.mxu3 %vm79_vm1, %v2161_v61  ;;  %v1736_v61 = vld [vmem:[%s2300_s2 + $0x10] sm:$0xff] }
 0x676   :  { %1166 = vmatpush.bf16.msra.mxu1 %v1736_v61 }
 0x681   :  { %v1305_v36 = vpop.permute.xlu1 %1304 }
 0x682   :  { %1712 = vmatpush.xpose.msk.msra.mxu0 %vm79_vm1, %v1305_v36 }
 0x685   :  { %1713 = vmatmul.msk.f32.vlgmr.msra.gmra.mxu0 %vm79_vm1, %v2165_v7 }
 0x697   :  { %v1054_v32 = vpop.f32.mrf.mxu3 }
 0x69c   :  { %v948_v29 = vpop.xlane.xlu0 %947 }
 0x69d   :  { %v958_v33 = vsub.f32 %v2044_v25, %v948_v29  ;;  %v1444_v29 = vpack.c.b16 %v1443_v11, %v1443_v11 }
 0x69f   :  { %v962_v34 = vmul.f32 1.442695, %v958_v33  ;;  %v1056_v35 = vpop.f32.mrf.mxu3 }
 0x6a1   :  { %1783 = vpow2.f32 %v962_v34 }
 0x6a4   :  { %v978_v59 = vpop.xlane.xlu0 %977 }
 0x6a5   :  { %1785 = vrcp.f32 %v978_v59  ;;  %v1121_v45 = vand.u32 2147483648, %v978_v59  ;;  %vm1115_vm13 = vweird.f32 %v978_v59  ;;  %v1119_v16 = vand.u32 2147483647, %v978_v59 }
 0x6a7   :  { %v1784_v37 = vpop.eup %1783  ;;  %v1122_v58 = vor.u32 1.1754944e-38, %v1121_v45  ;;  %vm1120_vm4 = vcmp.eq.f32.partialorder %v1119_v16, 8.507059e+37 }
 0x6a8   :  { %v982_v38 = vpack.c.bf16 %v1784_v37, %v1784_v37  ;;  %v970_v27 = vsel %vm185_vm2, %v1784_v37, 0.0 }
 0x6a9   :  { %971 = vadd.xlane.f32.xlu2 %v970_v27 }
 0x6aa   :  { %1680 = vmatmul.msk.bf16.vlgmr.msrb.gmra.mxu1 %vm185_vm2, %v982_v38 }
 0x6ab   :  { %v1786_v39 = vpop.eup %1785 }
 0x6ac   :  { %v1111_v40 = vmul.f32 %v1786_v39, %v978_v59  ;;  %v981_v42 = vpop.xlane.xlu0 %980  ;;  %vm1116_vm12 = vweird.f32 %v1786_v39  ;;  %v2197_v4 = vpop.xlane.xlu1 %974 }
 0x6ad   :  { %1787 = vrcp.f32 %v981_v42  ;;  %v1078_v43 = vpop.f32.mrf.mxu0  ;;  %vm1117_vm14 = vmor %vm1115_vm13, %vm1116_vm12  ;;  %v1135_v2 = vand.u32 2147483648, %v981_v42  ;;  %v1133_v56 = vand.u32 2147483647, %v981_v42  ;;  %vm1129_vm5 = vweird.f32 %v981_v42 }
 0x6ae   :  { %v1112_v46 = vsub.f32 1.0, %v1111_v40  ;;  %1789 = vrcp.f32 %v2197_v4  ;;  %v1107_v40 = vand.u32 2147483648, %v2197_v4  ;;  %vm1101_vm9 = vweird.f32 %v2197_v4 }
 0x6af   :  { %v1136_v1 = vor.u32 1.1754944e-38, %v1135_v2  ;;  %vm1134_vm7 = vcmp.eq.f32.partialorder %v1133_v56, 8.507059e+37 }
 0x6b0   :  { %v1113_v47 = vmul.f32 %v1786_v39, %v1112_v46  ;;  %v1105_v46 = vand.u32 2147483647, %v2197_v4 }
 0x6b2   :  { %v1114_v49 = vadd.f32 %v1786_v39, %v1113_v47  ;;  %vm1106_vm13 = vcmp.eq.f32.partialorder %v1105_v46, 8.507059e+37 }
 0x6b3   :  { %v1788_v25 = vpop.eup %1787 }
 0x6b4   :  { %v1125_v48 = vmul.f32 %v1788_v25, %v981_v42  ;;  %v1118_v3 = vsel %vm1117_vm14, %v1786_v39, %v1114_v49  ;;  %vm1130_vm15 = vweird.f32 %v1788_v25  ;;  %v1790_v36 = vpop.eup %1789 }
 0x6b5   :  { %v1080_v50 = vpop.f32.mrf.mxu0  ;;  %v1123_v0 = vsel %vm1120_vm4, %v1122_v58, %v1118_v3  ;;  %vm1131_vm6 = vmor %vm1129_vm5, %vm1130_vm15  ;;  %v1097_v33 = vmul.f32 %v1790_v36, %v2197_v4  ;;  %vm1102_vm8 = vweird.f32 %v1790_v36 }
 0x6b6   :  { %v1126_v26 = vsub.f32 1.0, %v1125_v48  ;;  %v2199_v57 = vmul.f32 %v1123_v0, %v1054_v32  ;;  %v2236_v32 = vpop.f32.mrf.mxu1  ;;  %vm1103_vm10 = vmor %vm1101_vm9, %vm1102_vm8  ;;  %v1108_v50 = vor.u32 1.1754944e-38, %v1107_v40  ;;  %v1739_v40 = vld [vmem:[%s2300_s2 + $0x18] sm:$0xff]  ;;  %s1837_s2 = smov [#allocation2]  }
 0x6b7   :  { %v1098_v34 = vsub.f32 1.0, %v1097_v33  ;;  %s1574_s13 = sshll.u32 %s1837_s2, 4  ;;  %s1575_s13 = int_to_ptr.vmem [resolvable:$true] %s1574_s13 }
 0x6b8   :  { %v1127_v55 = vmul.f32 %v1788_v25, %v1126_v26 }
 0x6b9   :  { %v1099_v59 = vmul.f32 %v1790_v36, %v1098_v34 }
 0x6ba   :  { %v1128_v60 = vadd.f32 %v1788_v25, %v1127_v55 }
 0x6bb   :  { %v1100_v39 = vadd.f32 %v1790_v36, %v1099_v59 }
 0x6bc   :  { %v1132_v6 = vsel %vm1131_vm6, %v1788_v25, %v1128_v60 }
 0x6bd   :  { %v1137_v8 = vsel %vm1134_vm7, %v1136_v1, %v1132_v6  ;;  %v1104_v45 = vsel %vm1103_vm10, %v1790_v36, %v1100_v39 }
 0x6be   :  { %v2201_v9 = vmul.f32 %v1137_v8, %v1078_v43  ;;  %v2240_v7 = vpop.f32.mrf.mxu1  ;;  %v1109_v52 = vsel %vm1106_vm13, %v1108_v50, %v1104_v45 }
 0x6bf   :  { %v1139_v56 = vmul.f32 %v1109_v52, %v2152_v18 }
 0x6c0   :  { %v1143_v10 = vpack.c.bf16 %v2201_v9, %v2199_v57 }
 0x6c1   :  { %1373 = vrot.lane.b32.xlu2 %v1372_v44, %s1836_s21 }
 0x6c4   :  { %v1398_v12 = vpop.permute.xlu1 %1397 }
 0x6c5   :  { %v1403_v13 = vsel %vm234_vm3, %v1398_v12, 0 }
 0x6c6   :  { %1412 = vmatpush.bf16.msrb.mxu0 %v1403_v13 }
 0x6f0   :  { %v2207_v14 = vpop.f32.mrf.mxu3 }
 0x6f1   :  { %v1330_v15 = vsel %vm185_vm2, %v2207_v14, -inf }
 0x6f2   :  { %v2211_v5 = vpop.f32.mrf.mxu0  ;;  %1331 = vmax.xlane.f32.xlu2 %v1330_v15 }
 0x6f3   :  { %v1333_v53 = vsel %vm185_vm2, %v2211_v5, -inf }
 0x6f4   :  { %1334 = vmax.xlane.f32.xlu0 %v1333_v53 }
 0x6f8   :  { %v2215_v17 = vpop.f32.mrf.mxu3 }
 0x6f9   :  { %v1336_v19 = vsel %vm185_vm2, %v2215_v17, -inf }
 0x6fc   :  { %1337 = vmax.xlane.f32.xlu0 %v1336_v19 }
 0x702   :  { %v2223_v23 = vpop.f32.mrf.mxu0 }
 0x703   :  { %v1339_v30 = vsel %vm185_vm2, %v2223_v23, -inf }
 0x704   :  { %1340 = vmax.xlane.f32.xlu0 %v1339_v30 }
 0x70a   :  { %1421 = vrot.lane.b32.xlu2 %v1420_v20, %s1836_s21 }
 0x718   :  { %1445 = vrot.lane.b32.xlu0 %v1444_v29, %s1836_s21 }
 0x71c   :  { %v972_v35 = vpop.xlane.xlu2 %971 }
 0x71d   :  { %1791 = vrcp.f32 %v972_v35  ;;  %v1093_v25 = vand.u32 2147483648, %v972_v35  ;;  %v1091_v49 = vand.u32 2147483647, %v972_v35  ;;  %vm1087_vm12 = vweird.f32 %v972_v35 }
 0x71f   :  { %v1094_v16 = vor.u32 1.1754944e-38, %v1093_v25  ;;  %vm1092_vm15 = vcmp.eq.f32.partialorder %v1091_v49, 8.507059e+37 }
 0x723   :  { %v1792_v37 = vpop.eup %1791 }
 0x724   :  { %v1083_v38 = vmul.f32 %v1792_v37, %v972_v35  ;;  %v1374_v27 = vpop.permute.xlu2 %1373  ;;  %vm1088_vm11 = vweird.f32 %v1792_v37  ;;  %v791_v35 = vadd.f32 %v2228_v28, %v2142_v63 }
 0x725   :  { %v1379_v42 = vsel %vm234_vm3, %v1374_v27, 0  ;;  %vm1089_vm14 = vmor %vm1087_vm12, %vm1088_vm11 }
 0x726   :  { %v1084_v43 = vsub.f32 1.0, %v1083_v38  ;;  %1388 = vmatpush.bf16.msrb.mxu3 %v1379_v42  ;;  %v794_v38 = vadd.f32 %v2236_v32, %v2144_v51 }
 0x727   :  { %v1006_v47 = vpop.f32.mrf.mxu1 }
 0x728   :  { %v1085_v48 = vmul.f32 %v1792_v37, %v1084_v43 }
 0x72a   :  { %v1086_v26 = vadd.f32 %v1792_v37, %v1085_v48  ;;  %1550 = vmatpush.bf16.msra.mxu3 %v1739_v40 }
 0x72c   :  { %v1090_v2 = vsel %vm1089_vm14, %v1792_v37, %v1086_v26 }
 0x72d   :  { %v1095_v3 = vsel %vm1092_vm15, %v1094_v16, %v1090_v2 }
 0x72e   :  { %v1138_v55 = vmul.f32 %v1095_v3, %v1006_v47 }
 0x72f   :  { %v1008_v58 = vpop.f32.mrf.mxu1 }
 0x730   :  { %v1142_v60 = vpack.c.bf16 %v1139_v56, %v1138_v55 }
 0x732   :  { %1690 = vmatmul.msk.bf16.vlgmr.msra.gmra.mxu1 %vm79_vm1, %v1142_v60 }
 0x742   :  { %1691 = vmatmul.msk.bf16.gmra.mxu1 %vm79_vm1, %v1143_v10 }
 0x765   :  { %v1332_v62 = vpop.xlane.xlu2 %1331 }
 0x766   :  { %v1342_v0 = vsub.f32 %v2207_v14, %v1332_v62 }
 0x767   :  { %v1335_v1 = vpop.xlane.xlu0 %1334 }
 0x768   :  { %v1346_v4 = vmul.f32 1.442695, %v1342_v0  ;;  %v1343_v6 = vsub.f32 %v2211_v5, %v1335_v1 }
 0x76a   :  { %1793 = vpow2.f32 %v1346_v4  ;;  %v1348_v8 = vmul.f32 1.442695, %v1343_v6 }
 0x76c   :  { %1795 = vpow2.f32 %v1348_v8 }
 0x76d   :  { %v1422_v18 = vpop.permute.xlu2 %1421 }
 0x76e   :  { %v1427_v44 = vsel %vm234_vm3, %v1422_v18, 0 }
 0x76f   :  { %v1338_v12 = vpop.xlane.xlu0 %1337  ;;  %1436 = vmatpush.bf16.msrb.mxu1 %v1427_v44 }
 0x770   :  { %v1794_v13 = vpop.eup %1793  ;;  %v1344_v57 = vsub.f32 %v2215_v17, %v1338_v12 }
 0x771   :  { %v1366_v9 = vpack.c.bf16 %v1794_v13, %v1794_v13  ;;  %v1354_v10 = vsel %vm185_vm2, %v1794_v13, 0.0 }
 0x772   :  { %v1796_v15 = vpop.eup %1795  ;;  %v1350_v14 = vmul.f32 1.442695, %v1344_v57  ;;  %1355 = vadd.xlane.f32.xlu2 %v1354_v10 }
 0x773   :  { %v1367_v53 = vpack.c.bf16 %v1796_v15, %v1796_v15  ;;  %1714 = vmatmul.msk.bf16.vlgmr.msrb.gmra.mxu3 %vm185_vm2, %v1366_v9  ;;  %v1357_v5 = vsel %vm185_vm2, %v1796_v15, 0.0 }
 0x774   :  { %1797 = vpow2.f32 %v1350_v14  ;;  %1358 = vadd.xlane.f32.xlu1 %v1357_v5 }
 0x775   :  { %1715 = vmatmul.msk.bf16.vlgmr.msrb.gmra.mxu0 %vm185_vm2, %v1367_v53 }
 0x777   :  { %v1341_v19 = vpop.xlane.xlu0 %1340 }
 0x778   :  { %v1345_v21 = vsub.f32 %v2223_v23, %v1341_v19  ;;  %v789_v23 = vadd.f32 %v2221_v22, %v2139_v41 }
 0x77a   :  { %v1798_v30 = vpop.eup %1797  ;;  %v1352_v17 = vmul.f32 1.442695, %v1345_v21 }
 0x77b   :  { %v1368_v24 = vpack.c.bf16 %v1798_v30, %v1798_v30  ;;  %v1360_v20 = vsel %vm185_vm2, %v1798_v30, 0.0 }
 0x77c   :  { %1799 = vpow2.f32 %v1352_v17  ;;  %1361 = vadd.xlane.f32.xlu0 %v1360_v20 }
 0x77d   :  { %1716 = vmatmul.msk.bf16.vlgmr.msrb.gmra.mxu1 %vm185_vm2, %v1368_v24 }
 0x782   :  { %v1800_v31 = vpop.eup %1799 }
 0x783   :  { %v1363_v61 = vsel %vm185_vm2, %v1800_v31, 0.0  ;;  %v1369_v29 = vpack.c.bf16 %v1800_v31, %v1800_v31 }
 0x784   :  { %1364 = vadd.xlane.f32.xlu2 %v1363_v61 }
 0x78a   :  { %v1446_v11 = vpop.permute.xlu0 %1445 }
 0x78b   :  { %v1451_v36 = vsel %vm234_vm3, %v1446_v11, 0 }
 0x78c   :  { %1460 = vmatpush.bf16.msra.mxu2 %v1451_v36 }
 0x78f   :  { %1717 = vmatmul.msk.bf16.vlgmr.msra.gmra.mxu2 %vm185_vm2, %v1369_v29 }
 0x7af   :  { %v1168_v33 = vpop.f32.mrf.mxu1 }
 0x7b0   :  { %v2268_v34 = vadd.f32 %v1168_v33, %v789_v23 }
 0x7b7   :  { %v1170_v59 = vpop.f32.mrf.mxu1 }
 0x7b8   :  { %v2272_v37 = vadd.f32 %v1170_v59, %v791_v35 }
 0x7bf   :  { %v1173_v27 = vpop.f32.mrf.mxu1 }
 0x7c0   :  { %v2276_v39 = vadd.f32 %v1173_v27, %v794_v38 }
 0x7c7   :  { %v2281_v49 = vpop.f32.mrf.mxu1 }
 0x7e5   :  { %v1356_v41 = vpop.xlane.xlu2 %1355 }
 0x7e6   :  { %1801 = vrcp.f32 %v1356_v41  ;;  %v1477_v47 = vand.u32 2147483648, %v1356_v41  ;;  %v1475_v48 = vand.u32 2147483647, %v1356_v41  ;;  %vm1471_vm3 = vweird.f32 %v1356_v41 }
 0x7e7   :  { %v1359_v22 = vpop.xlane.xlu1 %1358 }
 0x7e8   :  { %1803 = vrcp.f32 %v1359_v22  ;;  %v1491_v45 = vand.u32 2147483648, %v1359_v22  ;;  %v1489_v16 = vand.u32 2147483647, %v1359_v22  ;;  %v1478_v2 = vor.u32 1.1754944e-38, %v1477_v47 }
 0x7e9   :  { %vm1485_vm6 = vweird.f32 %v1359_v22  ;;  %vm1476_vm7 = vcmp.eq.f32.partialorder %v1475_v48, 8.507059e+37 }
 0x7ea   :  { %v1492_v56 = vor.u32 1.1754944e-38, %v1491_v45  ;;  %vm1490_vm9 = vcmp.eq.f32.partialorder %v1489_v16, 8.507059e+37 }
 0x7ec   :  { %v1802_v42 = vpop.eup %1801 }
 0x7ed   :  { %v1467_v63 = vmul.f32 %v1802_v42, %v1356_v41  ;;  %vm1472_vm2 = vweird.f32 %v1802_v42 }
 0x7ee   :  { %v1804_v28 = vpop.eup %1803  ;;  %vm1473_vm5 = vmor %vm1471_vm3, %vm1472_vm2 }
 0x7ef   :  { %v1468_v43 = vsub.f32 1.0, %v1467_v63  ;;  %v1481_v46 = vmul.f32 %v1804_v28, %v1359_v22  ;;  %v1362_v51 = vpop.xlane.xlu0 %1361  ;;  %vm1486_vm4 = vweird.f32 %v1804_v28 }
 0x7f0   :  { %1805 = vrcp.f32 %v1362_v51  ;;  %vm1487_vm8 = vmor %vm1485_vm6, %vm1486_vm4  ;;  %v1505_v30 = vand.u32 2147483648, %v1362_v51  ;;  %vm1499_vm11 = vweird.f32 %v1362_v51  ;;  %v1503_v17 = vand.u32 2147483647, %v1362_v51 }
 0x7f1   :  { %v1482_v25 = vsub.f32 1.0, %v1481_v46  ;;  %v1469_v32 = vmul.f32 %v1802_v42, %v1468_v43  ;;  %v796_v46 = vadd.f32 %v2240_v7, %v2148_v54 }
 0x7f2   :  { %v1414_v50 = vpop.f32.mrf.mxu0  ;;  %v1506_v11 = vor.u32 1.1754944e-38, %v1505_v30  ;;  %vm1504_vm2 = vcmp.eq.f32.partialorder %v1503_v17, 8.507059e+37 }
 0x7f3   :  { %v1483_v26 = vmul.f32 %v1804_v28, %v1482_v25  ;;  %v1470_v52 = vadd.f32 %v1802_v42, %v1469_v32 }
 0x7f5   :  { %v1484_v3 = vadd.f32 %v1804_v28, %v1483_v26  ;;  %v1474_v55 = vsel %vm1473_vm5, %v1802_v42, %v1470_v52 }
 0x7f6   :  { %v1390_v58 = vpop.f32.mrf.mxu3  ;;  %v1479_v60 = vsel %vm1476_vm7, %v1478_v2, %v1474_v55  ;;  %v1806_v8 = vpop.eup %1805 }
 0x7f7   :  { %v1488_v62 = vsel %vm1487_vm8, %v1804_v28, %v1484_v3  ;;  %v1365_v0 = vpop.xlane.xlu2 %1364  ;;  %v1522_v6 = vmul.f32 %v1479_v60, %v1390_v58  ;;  %v1495_v13 = vmul.f32 %v1806_v8, %v1362_v51  ;;  %vm1500_vm10 = vweird.f32 %v1806_v8 }
 0x7f8   :  { %v1493_v1 = vsel %vm1490_vm9, %v1492_v56, %v1488_v62  ;;  %1807 = vrcp.f32 %v1365_v0  ;;  %v1519_v20 = vand.u32 2147483648, %v1365_v0  ;;  %vm1501_vm13 = vmor %vm1499_vm11, %vm1500_vm10  ;;  %vm1513_vm14 = vweird.f32 %v1365_v0 }
 0x7f9   :  { %v1523_v4 = vmul.f32 %v1493_v1, %v1414_v50  ;;  %v1496_v15 = vsub.f32 1.0, %v1495_v13  ;;  %v1517_v61 = vand.u32 2147483647, %v1365_v0 }
 0x7fa   :  { %v1416_v18 = vpop.f32.mrf.mxu0  ;;  %v1438_v44 = vpop.f32.mrf.mxu1  ;;  %v1520_v23 = vor.u32 1.1754944e-38, %v1519_v20 }
 0x7fb   :  { %v1526_v12 = vpack.c.bf16 %v1523_v4, %v1522_v6  ;;  %v1497_v5 = vmul.f32 %v1806_v8, %v1496_v15  ;;  %vm1518_vm3 = vcmp.eq.f32.partialorder %v1517_v61, 8.507059e+37 }
 0x7fd   :  { %1724 = vmatmul.msk.bf16.vlgmr.msra.gmra.mxu3 %vm79_vm1, %v1526_v12  ;;  %v1498_v21 = vadd.f32 %v1806_v8, %v1497_v5 }
 0x7fe   :  { %v1808_v57 = vpop.eup %1807  ;;  %v1392_v9 = vpop.f32.mrf.mxu3 }
 0x7ff   :  { %v1509_v10 = vmul.f32 %v1808_v57, %v1365_v0  ;;  %vm1514_vm12 = vweird.f32 %v1808_v57  ;;  %v1502_v31 = vsel %vm1501_vm13, %v1806_v8, %v1498_v21 }
 0x800   :  { %vm1515_vm15 = vmor %vm1513_vm14, %vm1514_vm12  ;;  %v1507_v29 = vsel %vm1504_vm2, %v1506_v11, %v1502_v31 }
 0x801   :  { %v1510_v53 = vsub.f32 1.0, %v1509_v10  ;;  %v1524_v59 = vmul.f32 %v1507_v29, %v1438_v44 }
 0x802   :  { %v1440_v14 = vpop.f32.mrf.mxu1 }
 0x803   :  { %v1511_v19 = vmul.f32 %v1808_v57, %v1510_v53 }
 0x805   :  { %v1512_v24 = vadd.f32 %v1808_v57, %v1511_v19 }
 0x807   :  { %v1516_v36 = vsel %vm1515_vm15, %v1808_v57, %v1512_v24 }
 0x808   :  { %v1521_v35 = vsel %vm1518_vm3, %v1520_v23, %v1516_v36 }
 0x812   :  { %v1462_v33 = vpop.f32.mrf.mxu2 }
 0x813   :  { %v1525_v38 = vmul.f32 %v1521_v35, %v1462_v33 }
 0x815   :  { %v1527_v27 = vpack.c.bf16 %v1525_v38, %v1524_v59 }
 0x817   :  { %1725 = vmatmul.msk.bf16.gmra.mxu3 %vm79_vm1, %v1527_v27 }
 0x81a   :  { %v1464_v40 = vpop.f32.mrf.mxu2 }
 0x880   :  { %v1552_v41 = vpop.f32.mrf.mxu3 }
 0x881   :  { %v1562_v22 = vadd.f32 %v1552_v41, %v2268_v34  ;;  %v1181_v34 = vadd.f32 %v2281_v49, %v796_v46 }
 0x883   :  { %1566 = vst.msk [vmem:[#allocation2] sm:$0xff] %vm46_vm0, %v1562_v22 }
 0x888   :  { %v1554_v42 = vpop.f32.mrf.mxu3 }
 0x889   :  { %v1563_v63 = vadd.f32 %v1554_v42, %v2272_v37 }
 0x88b   :  { %1567 = vst.msk [vmem:[#allocation2 + $0x8] sm:$0xff] %vm46_vm0, %v1563_v63 }
 0x89a   :  { %v1557_v28 = vpop.f32.mrf.mxu3 }
 0x89b   :  { %v1564_v43 = vadd.f32 %v1557_v28, %v2276_v39 }
 0x89d   :  { %1568 = vst.msk [vmem:[#allocation2 + $0x10] sm:$0xff] %vm46_vm0, %v1564_v43 }
 0x8a2   :  { %v1559_v47 = vpop.f32.mrf.mxu3 }
 0x8a3   :  { %v1565_v37 = vadd.f32 %v1559_v47, %v1181_v34 }
 0x8a5   :  { %1569 = vst.msk [vmem:[#allocation2 + $0x18] sm:$0xff] %vm46_vm0, %v1565_v37 }
 0x8a6   :  { %1582 = dma.vmem_to_hbm [thread:$0]  %s1575_s13, 512, %s1577_s16, [#allocation3], %s1838_s17, %s1838_s17, %s1839_s18  }
 0x8a7   :  { %1833 = dma.done.wait [#allocation3], 512  }
 0x8a8   :  { %1834 = vsyncadd [#allocation3], 4294966784 }
 0x8a9   :  { %1587 = vsyncpa [#allocation3], 1 }

</bundles_post_ra>
